<compile_context>
chip_gen: v7x
topology: tpu7x:2x2x1
jax: 0.10.0
libtpu: 0.0.40
codegen_flags: <defaults>
</compile_context>

<pallas_src>
import jax
import jax.numpy as jnp
from jax.experimental import pallas as pl
from jax.experimental.pallas import tpu as pltpu

TM = 256        # row tile: fills the 256-wide MXU on v6e/v7x, multiple of 128 for v5e
COUT_PAD = 128  # lane-dense padded width for the narrow heatmap output


# ----------------------------- Pallas kernel --------------------------------
def circlenet_head_kernel(x_ref, w1_ref, shift_ref, whm_ref, bhm_ref, o_ref):
    # 1x1 conv (896 -> 256) as a bf16 MXU matmul, f32 accumulation.
    # BN scale is pre-folded into w1, so only the per-channel shift remains.
    h = jnp.dot(x_ref[...], w1_ref[...], preferred_element_type=jnp.float32)
    # conv1 bias + BatchNorm2d (eval) shift, then ReLU (VPU).
    h = jnp.maximum(h + shift_ref[...], 0.0)
    # Heatmap head: 1x1 conv 256 -> 128 (lane-padded; live columns = num_classes+1).
    o = jnp.dot(h.astype(whm_ref.dtype), whm_ref[...], preferred_element_type=jnp.float32)
    o_ref[...] = (o + bhm_ref[...]).astype(o_ref.dtype)


def circlenet_head(x_rows, w1_scaled, shift, w_hm_pad, b_hm_pad, *, tm=TM):
    """x_rows: [P, 896] activations. Weights pre-folded/padded, bf16."""
    P, cin = x_rows.shape
    cmid = w1_scaled.shape[1]
    cpad = w_hm_pad.shape[1]

    x_rows = x_rows.astype(jnp.bfloat16)
    n_tiles = pl.cdiv(P, tm)
    p_pad = n_tiles * tm
    if p_pad != P:
        x_rows = jnp.pad(x_rows, ((0, p_pad - P), (0, 0)))

    out = pl.pallas_call(
        circlenet_head_kernel,
        out_shape=jax.ShapeDtypeStruct((p_pad, cpad), jnp.float32),
        grid_spec=pltpu.PrefetchScalarGridSpec(
            num_scalar_prefetch=0,
            grid=(n_tiles,),
            in_specs=[
                pl.BlockSpec((tm, cin), lambda i: (i, 0)),      # activations (row-tiled)
                pl.BlockSpec((cin, cmid), lambda i: (0, 0)),    # conv1 weight * BN scale (resident)
                pl.BlockSpec((1, cmid), lambda i: (0, 0)),      # folded BN shift (+conv1 bias)
                pl.BlockSpec((cmid, cpad), lambda i: (0, 0)),   # heatmap weight (lane-padded)
                pl.BlockSpec((1, cpad), lambda i: (0, 0)),      # heatmap bias (lane-padded)
            ],
            out_specs=pl.BlockSpec((tm, cpad), lambda i: (i, 0)),
        ),
        compiler_params=pltpu.CompilerParams(
            dimension_semantics=("parallel",),
            vmem_limit_bytes=64 << 20,
        ),
    )(x_rows, w1_scaled, shift, w_hm_pad, b_hm_pad)
    return out[:P]


# ------------------------------ JAX glue (NHWC) -------------------------------
def nearest_upsample_nhwc(x, size):
    # Matches F.upsample(x, size) default mode='nearest' (applied here in NHWC).
    _, h, w, _ = x.shape
    H, W = size
    rows = (jnp.arange(H) * h) // H
    cols = (jnp.arange(W) * w) // W
    return x[:, rows[:, None], cols[None, :], :]


def feature_fusion(features):
    # FeatureFusionNetwork: upsample features[1:] to features[0]'s spatial size,
    # concat on channels (last axis in NHWC).
    size = features[0].shape[1:3]
    resized = [nearest_upsample_nhwc(f, size) for f in features[1:]]
    return jnp.concatenate(resized, axis=-1)


def avg_pool_nchw(x, s):
    n, c, h, w = x.shape
    return x.reshape(n, c, h // s, s, w // s, s).mean(axis=(3, 5))


def stub_backbone(x, proj_ws):
    # TODO(synk): resnet18 backbone definition not provided in the module snippet;
    # deterministic stub producing resnet18-shaped pyramid features
    # (channels 64/64/128/256/512 at strides 2/4/8/16/32), emitted directly in NHWC.
    feats = []
    for stride, w in zip((2, 4, 8, 16, 32), proj_ws):
        p = avg_pool_nchw(x, stride)
        feats.append(jnp.einsum('nchw,cd->nhwd', p, w))   # NHWC output, no extra transpose pass
    return tuple(feats)  # c1, c2, c3, c4, c5


# ------------------------------ forward --------------------------------------
def circlenet_forward(img, params):
    c1, c2, c3, c4, c5 = stub_backbone(img, params["backbone_proj"])
    fused = feature_fusion([c2, c3, c4, c5])               # [N, Hf, Wf, 896] NHWC
    n, hf, wf, cf = fused.shape
    x_rows = fused.reshape(n * hf * wf, cf)
    out_rows = circlenet_head(
        x_rows,
        params["w1_scaled"],
        params["bn_shift"][None, :],
        params["w_hm_pad"],
        params["b_hm_pad"][None, :],
    )
    cout = params["cout"]
    out = out_rows[:, :cout].reshape(n, hf, wf, cout).transpose(0, 3, 1, 2)  # NCHW, tiny tensor
    return dict(center_heatmap=out[:, :-1], offsets=out[:, -1:])


if __name__ == "__main__":
    num_classes = 1
    N, H, W = 2, 32, 32

    key = jax.random.PRNGKey(0)
    k_img, k_bb, k_c1, k_bn, k_hm = jax.random.split(key, 5)

    img = jax.random.normal(k_img, (N, 3, H, W), jnp.float32)

    # Backbone stub projections (3 -> per-stage channel counts).
    bb_keys = jax.random.split(k_bb, 5)
    bb_chans = (64, 64, 128, 256, 512)
    proj_ws = [0.1 * jax.random.normal(k, (3, c), jnp.float32) for k, c in zip(bb_keys, bb_chans)]

    # conv1: 1x1 conv 896 -> 256, stored as [Cin, Cout] for row-major matmul.
    w1 = 0.02 * jax.random.normal(k_c1, (896, 256), jnp.float32)
    b1 = 0.01 * jax.random.normal(jax.random.fold_in(k_c1, 1), (256,), jnp.float32)

    # bn1: eval-mode BatchNorm2d(256) with running stats -> folded per-channel affine.
    gamma = 1.0 + 0.05 * jax.random.normal(jax.random.fold_in(k_bn, 0), (256,), jnp.float32)
    beta = 0.05 * jax.random.normal(jax.random.fold_in(k_bn, 1), (256,), jnp.float32)
    r_mean = 0.05 * jax.random.normal(jax.random.fold_in(k_bn, 2), (256,), jnp.float32)
    r_var = jnp.abs(1.0 + 0.05 * jax.random.normal(jax.random.fold_in(k_bn, 3), (256,), jnp.float32))
    eps = 1e-5
    bn_scale = gamma / jnp.sqrt(r_var + eps)
    bn_shift = (b1 - r_mean) * bn_scale + beta

    # TODO(synk): Heatmap_layer definition not provided; modeled as a single 1x1 conv
    # 256 -> num_classes+1 (matches the module's in/out channel contract).
    c_out = num_classes + 1
    w_hm = 0.02 * jax.random.normal(k_hm, (256, c_out), jnp.float32)
    b_hm = 0.01 * jax.random.normal(jax.random.fold_in(k_hm, 1), (c_out,), jnp.float32)

    # Fold BN scale into conv1 weight; cast matmul operands to bf16; lane-pad the
    # heatmap head to 128 columns (padded columns zero-initialized, sliced off later).
    w1_scaled = (w1 * bn_scale[None, :]).astype(jnp.bfloat16)
    w_hm_pad = jnp.zeros((256, COUT_PAD), jnp.bfloat16).at[:, :c_out].set(w_hm.astype(jnp.bfloat16))
    b_hm_pad = jnp.zeros((COUT_PAD,), jnp.float32).at[:c_out].set(b_hm)

    params = dict(backbone_proj=proj_ws, w1_scaled=w1_scaled, bn_shift=bn_shift,
                  w_hm_pad=w_hm_pad, b_hm_pad=b_hm_pad, cout=c_out)

    out = circlenet_forward(img, params)
    jax.block_until_ready(out)

    # Pure-JAX reference check of the Pallas head (same bf16 operands, f32 accumulation).
    c1, c2, c3, c4, c5 = stub_backbone(img, proj_ws)
    fused = feature_fusion([c2, c3, c4, c5])
    nf, hf, wf, cf = fused.shape
    xr = fused.reshape(-1, cf).astype(jnp.bfloat16)
    h_ref = jnp.maximum(
        jnp.dot(xr, w1_scaled, preferred_element_type=jnp.float32) + bn_shift[None, :], 0.0)
    ref = jnp.dot(h_ref.astype(jnp.bfloat16), w_hm_pad,
                  preferred_element_type=jnp.float32) + b_hm_pad[None, :]
    ref = ref[:, :c_out].reshape(nf, hf, wf, c_out).transpose(0, 3, 1, 2)
    got = jnp.concatenate([out["center_heatmap"], out["offsets"]], axis=1)
    assert jnp.max(jnp.abs(got - ref)) < 1e-2, "Pallas head mismatch vs JAX reference"

    assert out["center_heatmap"].shape == (N, num_classes, H // 4, W // 4)
    assert out["offsets"].shape == (N, 1, H // 4, W // 4)
    print("KERNEL_OK")
</pallas_src>

<mosaic_0001>
module attributes {stable_mosaic.version = 11 : i64} {
  func.func @circlenet_head_kernel(%arg0: i32, %arg1: memref<256x896xbf16, #tpu.memory_space<vmem>>, %arg2: memref<896x256xbf16, #tpu.memory_space<vmem>>, %arg3: memref<1x256xf32, #tpu.memory_space<vmem>>, %arg4: memref<256x128xbf16, #tpu.memory_space<vmem>>, %arg5: memref<1x128xf32, #tpu.memory_space<vmem>>, %arg6: memref<256x128xf32, #tpu.memory_space<vmem>>) attributes {dimension_semantics = [#tpu.dimension_semantics<parallel>], iteration_bounds = array<i64: 1>, scalar_prefetch = 0 : i64, scratch_operands = 0 : i64, tpu.core_type = #tpu.core_type<tc>, window_params = [{transform_indices = @transform_0, window_bounds = array<i64: 256, 896>}, {pipeline_mode = #tpu.pipeline_mode<synchronous>, transform_indices = @transform_1, window_bounds = array<i64: 896, 256>}, {pipeline_mode = #tpu.pipeline_mode<synchronous>, transform_indices = @transform_2, window_bounds = array<i64: 1, 256>}, {pipeline_mode = #tpu.pipeline_mode<synchronous>, transform_indices = @transform_3, window_bounds = array<i64: 256, 128>}, {pipeline_mode = #tpu.pipeline_mode<synchronous>, transform_indices = @transform_4, window_bounds = array<i64: 1, 128>}, {transform_indices = @transform_5, window_bounds = array<i64: 256, 128>}]} {
    %c0 = arith.constant 0 : index
    %c0_0 = arith.constant 0 : index
    %0 = vector.load %arg1[%c0, %c0_0] : memref<256x896xbf16, #tpu.memory_space<vmem>>, vector<256x896xbf16>
    %c0_1 = arith.constant 0 : index
    %c0_2 = arith.constant 0 : index
    %1 = vector.load %arg2[%c0_1, %c0_2] : memref<896x256xbf16, #tpu.memory_space<vmem>>, vector<896x256xbf16>
    %cst = arith.constant dense<0.000000e+00> : vector<256x256xf32>
    %2 = tpu.matmul %0, %1, %cst {dimension_numbers = #tpu.dot_dimension_numbers<[1], [0], [0], [1], [0, 0, 1, 1], [], []>} : vector<256x896xbf16>, vector<896x256xbf16>, vector<256x256xf32> -> vector<256x256xf32>
    %c0_3 = arith.constant 0 : index
    %c0_4 = arith.constant 0 : index
    %3 = vector.load %arg3[%c0_3, %c0_4] : memref<1x256xf32, #tpu.memory_space<vmem>>, vector<1x256xf32>
    %4 = vector.broadcast %3 : vector<1x256xf32> to vector<256x256xf32>
    %5 = arith.addf %2, %4 : vector<256x256xf32>
    %cst_5 = arith.constant 0.000000e+00 : f32
    %6 = vector.broadcast %cst_5 : f32 to vector<256x256xf32>
    %7 = arith.maximumf %5, %6 : vector<256x256xf32>
    %8 = arith.truncf %7 : vector<256x256xf32> to vector<256x256xbf16>
    %c0_6 = arith.constant 0 : index
    %c0_7 = arith.constant 0 : index
    %9 = vector.load %arg4[%c0_6, %c0_7] : memref<256x128xbf16, #tpu.memory_space<vmem>>, vector<256x128xbf16>
    %cst_8 = arith.constant dense<0.000000e+00> : vector<256x128xf32>
    %10 = tpu.matmul %8, %9, %cst_8 {dimension_numbers = #tpu.dot_dimension_numbers<[1], [0], [0], [1], [0, 0, 1, 1], [], []>} : vector<256x256xbf16>, vector<256x128xbf16>, vector<256x128xf32> -> vector<256x128xf32>
    %c0_9 = arith.constant 0 : index
    %c0_10 = arith.constant 0 : index
    %11 = vector.load %arg5[%c0_9, %c0_10] : memref<1x128xf32, #tpu.memory_space<vmem>>, vector<1x128xf32>
    %12 = vector.broadcast %11 : vector<1x128xf32> to vector<256x128xf32>
    %13 = arith.addf %10, %12 : vector<256x128xf32>
    %c0_11 = arith.constant 0 : index
    %c0_12 = arith.constant 0 : index
    %14 = vector.load %arg6[%c0_11, %c0_12] : memref<256x128xf32, #tpu.memory_space<vmem>>, vector<256x128xf32>
    tpu.vector_store %arg6[%c0_11, %c0_12], %13 {strides = array<i32>} : memref<256x128xf32, #tpu.memory_space<vmem>>, vector<256x128xf32>,
    return
  }
  func.func @transform_0(%arg0: i32) -> (i32, i32) {
    %c0_i32 = arith.constant 0 : i32
    %c0_i32_0 = arith.constant 0 : i32
    return %arg0, %c0_i32 : i32, i32
  }
  func.func @transform_1(%arg0: i32) -> (i32, i32) {
    %c0_i32 = arith.constant 0 : i32
    %c0_i32_0 = arith.constant 0 : i32
    %c0_i32_1 = arith.constant 0 : i32
    return %c0_i32, %c0_i32_0 : i32, i32
  }
  func.func @transform_2(%arg0: i32) -> (i32, i32) {
    %c0_i32 = arith.constant 0 : i32
    %c0_i32_0 = arith.constant 0 : i32
    %c0_i32_1 = arith.constant 0 : i32
    return %c0_i32, %c0_i32_0 : i32, i32
  }
  func.func @transform_3(%arg0: i32) -> (i32, i32) {
    %c0_i32 = arith.constant 0 : i32
    %c0_i32_0 = arith.constant 0 : i32
    %c0_i32_1 = arith.constant 0 : i32
    return %c0_i32, %c0_i32_0 : i32, i32
  }
  func.func @transform_4(%arg0: i32) -> (i32, i32) {
    %c0_i32 = arith.constant 0 : i32
    %c0_i32_0 = arith.constant 0 : i32
    %c0_i32_1 = arith.constant 0 : i32
    return %c0_i32, %c0_i32_0 : i32, i32
  }
  func.func @transform_5(%arg0: i32) -> (i32, i32) {
    %c0_i32 = arith.constant 0 : i32
    %c0_i32_0 = arith.constant 0 : i32
    return %arg0, %c0_i32 : i32, i32
  }
}

</mosaic_0001>

<bundles_post_ra>
// kernel: tpu_custom_call.1
= control target key start
LH: loop header
LB: loop body
LE: loop exit
PB: predicated region body
PF: predicated region fallthrough
CT: control target
= control target key end

     0   :  { %10 = vsyncpa [#allocation3], 0  ;;  %s4386_s0 = inlined_call_operand.hbm [shape: bf16[256,896], index: 0, kind: input, shape index: {}]   ;;  %s4387_s1 = inlined_call_operand.hbm [shape: bf16[896,256], index: 1, kind: input, shape index: {}]   ;;  %s4388_s2 = inlined_call_operand.hbm [shape: f32[1,256], index: 2, kind: input, shape index: {}]   ;;  %s4389_s3 = inlined_call_operand.hbm [shape: bf16[256,128], index: 3, kind: input, shape index: {}]   ;;  %s4390_s4 = inlined_call_operand.hbm [shape: f32[1,128], index: 4, kind: input, shape index: {}]   ;;  %s4391_s5 = inlined_call_operand.hbm [shape: f32[256,128], index: 5, kind: output, shape index: {}]  }
   0x1   :  { %11 = vsyncpa [#allocation6], 0 }
   0x2   :  { %12 = vsyncpa [#allocation9], 0 }
   0x3   :  { %13 = vsyncpa [#allocation4], 0  ;;  %s3827_s18 = smov [#allocation5]   ;;  %s3687_s22 = scalar_lea.hbm %s4387_s1, 14336 }
   0x4   :  { %s31_s19 = sshll.u32 %s3827_s18, 4  ;;  %p3688_p0 = scmp.ne.s32.totalorder %s4387_s1, %s3687_s22  ;;  %s32_s19 = int_to_ptr.vmem [resolvable:$true] %s31_s19 }
   0x5   :  { %p3691_p1 = scmp.lt.u32.totalorder %s3687_s22, %s4387_s1 }
   0x7   :  { %p3693_p2 = pnand %p3691_p1, %p3688_p0 }
   0x9   :  { %3696 = shalt.err (!%p3693_p2)
}
   0xa   :  { %s3697_s27 = scalar_lea.vmem %s32_s19, 14336  ;;  %p3702_p4 = scmp.lt.s32.totalorder %s32_s19, %s32_s19 }
   0xb   :  { %p3698_p3 = scmp.ne.s32.totalorder %s32_s19, %s3697_s27  ;;  %p3703_p5 = scmp.lt.s32.totalorder %s3697_s27, %s3697_s27 }
   0xd   :  { %p3704_p6 = por %p3703_p5, %p3702_p4 }
   0xf   :  { %p3705_p7 = pnand %p3704_p6, %p3698_p3 }
  0x11   :  { %3708 = shalt.err (!%p3705_p7)
}
  0x12   :  { %s3828_s28 = smov 128   ;;  %s3829_s29 = smov 8  }
  0x13   :  { %37 = dma.hbm_to_vmem [thread:$0]  %s4387_s1, 14336, %s32_s19, [#allocation6], %s3828_s28, %s3828_s28, %s3829_s29  }
  0x14   :  { %s3830_s7 = smov [#allocation8]   ;;  %s3709_s11 = scalar_lea.hbm %s4389_s3, 2048 }
  0x15   :  { %s53_s8 = sshll.u32 %s3830_s7, 4  ;;  %p3710_p8 = scmp.ne.s32.totalorder %s4389_s3, %s3709_s11  ;;  %s54_s8 = int_to_ptr.vmem [resolvable:$true] %s53_s8 }
  0x16   :  { %p3713_p9 = scmp.lt.u32.totalorder %s3709_s11, %s4389_s3 }
  0x18   :  { %p3715_p10 = pnand %p3713_p9, %p3710_p8 }
  0x1a   :  { %3718 = shalt.err (!%p3715_p10)
}
  0x1b   :  { %s3719_s16 = scalar_lea.vmem %s54_s8, 2048  ;;  %p3724_p12 = scmp.lt.s32.totalorder %s54_s8, %s54_s8 }
  0x1c   :  { %p3720_p11 = scmp.ne.s32.totalorder %s54_s8, %s3719_s16  ;;  %p3725_p13 = scmp.lt.s32.totalorder %s3719_s16, %s3719_s16 }
  0x1e   :  { %p3726_p0 = por %p3725_p13, %p3724_p12 }
  0x20   :  { %p3727_p1 = pnand %p3726_p0, %p3720_p11 }
  0x22   :  { %3730 = shalt.err (!%p3727_p1)
}
  0x23   :  { %s3831_s1 = smov 64   ;;  %s3832_s17 = smov 4  }
  0x24   :  { %59 = dma.hbm_to_vmem [thread:$0]  %s4389_s3, 2048, %s54_s8, [#allocation9], %s3831_s1, %s3831_s1, %s3832_s17  }
  0x25   :  { %s3833_s20 = smov [#allocation2]   ;;  %s3731_s24 = scalar_lea.hbm %s4386_s0, 14336 }
  0x26   :  { %s19_s21 = sshll.u32 %s3833_s20, 4  ;;  %p3732_p2 = scmp.ne.s32.totalorder %s4386_s0, %s3731_s24  ;;  %s20_s21 = int_to_ptr.vmem [resolvable:$true] %s19_s21 }
  0x27   :  { %p3735_p3 = scmp.lt.u32.totalorder %s3731_s24, %s4386_s0 }
  0x29   :  { %p3737_p4 = pnand %p3735_p3, %p3732_p2 }
  0x2b   :  { %3740 = shalt.err (!%p3737_p4)
}
  0x2c   :  { %s3741_s6 = scalar_lea.vmem %s20_s21, 14336  ;;  %p3746_p6 = scmp.lt.s32.totalorder %s20_s21, %s20_s21 }
  0x2d   :  { %p3742_p5 = scmp.ne.s32.totalorder %s20_s21, %s3741_s6  ;;  %p3747_p7 = scmp.lt.s32.totalorder %s3741_s6, %s3741_s6 }
  0x2f   :  { %p3748_p8 = por %p3747_p7, %p3746_p6 }
  0x31   :  { %p3749_p9 = pnand %p3748_p8, %p3742_p5 }
  0x33   :  { %3752 = shalt.err (!%p3749_p9)
}
  0x34   :  { %s3834_s3 = smov 448   ;;  %s3835_s7 = smov 28  }
  0x35   :  { %25 = dma.hbm_to_vmem [thread:$0]  %s4386_s0, 14336, %s20_s21, [#allocation3], %s3834_s3, %s3834_s3, %s3835_s7  }
  0x36   :  { %s3836_s10 = smov [#allocation7]   ;;  %s3837_s12 = smov [#allocation10]  }
  0x37   :  { %s44_s11 = sshll.u32 %s3836_s10, 4  ;;  %s66_s13 = sshll.u32 %s3837_s12, 4  ;;  %s45_s11 = int_to_ptr.vmem [resolvable:$true] %s44_s11  ;;  %s67_s13 = int_to_ptr.vmem [resolvable:$true] %s66_s13 }
  0x38   :  { %s3753_s16 = scalar_lea.hbm %s4388_s2, 32 }
  0x39   :  { %p3754_p10 = scmp.ne.s32.totalorder %s4388_s2, %s3753_s16  ;;  %p3757_p11 = scmp.lt.u32.totalorder %s3753_s16, %s4388_s2 }
  0x3b   :  { %p3759_p12 = pnand %p3757_p11, %p3754_p10 }
  0x3d   :  { %3762 = shalt.err (!%p3759_p12)
}
  0x3e   :  { %s3763_s0 = scalar_lea.vmem %s45_s11, 32  ;;  %p3768_p0 = scmp.lt.s32.totalorder %s45_s11, %s45_s11 }
  0x3f   :  { %p3764_p13 = scmp.ne.s32.totalorder %s45_s11, %s3763_s0  ;;  %p3769_p1 = scmp.lt.s32.totalorder %s3763_s0, %s3763_s0 }
  0x41   :  { %p3770_p2 = por %p3769_p1, %p3768_p0 }
  0x43   :  { %p3771_p3 = pnand %p3770_p2, %p3764_p13 }
  0x45   :  { %3774 = shalt.err (!%p3771_p3)
}
  0x46   :  { %47 = dma.hbm_to_vmem [thread:$0]  %s4388_s2, 32, %s45_s11, [#allocation6]  }
  0x47   :  { %s3775_s24 = scalar_lea.hbm %s4390_s4, 16 }
  0x48   :  { %p3776_p4 = scmp.ne.s32.totalorder %s4390_s4, %s3775_s24  ;;  %p3779_p5 = scmp.lt.u32.totalorder %s3775_s24, %s4390_s4 }
  0x4a   :  { %p3781_p6 = pnand %p3779_p5, %p3776_p4 }
  0x4c   :  { %3784 = shalt.err (!%p3781_p6)
}
  0x4d   :  { %s3785_s6 = scalar_lea.vmem %s67_s13, 16  ;;  %s3789_s3 = scalar_lea.vmem %s67_s13, 32 }
  0x4e   :  { %p3786_p7 = scmp.ne.s32.totalorder %s67_s13, %s3785_s6  ;;  %p3790_p8 = scmp.lt.s32.totalorder %s67_s13, %s67_s13 }
  0x4f   :  { %p3791_p9 = scmp.lt.s32.totalorder %s3789_s3, %s3785_s6 }
  0x51   :  { %p3792_p10 = por %p3791_p9, %p3790_p8 }
  0x53   :  { %p3793_p11 = pnand %p3792_p10, %p3786_p7 }
  0x55   :  { %3796 = shalt.err (!%p3793_p11)
}
  0x56   :  { %69 = dma.hbm_to_vmem [thread:$0]  %s4390_s4, 16, %s67_s13, [#allocation9]  }
  0x57   :  { %3819 = dma.done.wait [#allocation3], 14336  }
  0x58   :  { %3820 = vsyncadd [#allocation3], 4294952960 }
  0x59   :  { %3821 = dma.done.wait [#allocation6], 14368  }
  0x5a   :  { %3822 = vsyncadd [#allocation6], 4294952928 }
  0x5b   :  { %3823 = dma.done.wait [#allocation9], 2064  }
  0x5c   :  { %3824 = vsyncadd [#allocation9], 4294965232  ;;  %v3933_v0 = vld [vmem:[#allocation5 + $0x104] ss:$8 sps:$4 sm:$0xff]   ;;  %v3935_v1 = vld [vmem:[#allocation5 + $0x100] ss:$8 sps:$4 sm:$0xff]  }
  0x5d   :  { %1667 = vmatprep.subr.bf16.mxu0 %v3933_v0  ;;  %v3938_v2 = vld [vmem:[#allocation5 + $0x114] ss:$8 sps:$4 sm:$0xff]   ;;  %v3941_v3 = vld [vmem:[#allocation5 + $0x110] ss:$8 sps:$4 sm:$0xff]   ;;  %v3944_v4 = vld [vmem:[#allocation5 + $0x124] ss:$8 sps:$4 sm:$0xff]  }
  0x5e   :  { %1668 = vmatpush1.bf16.msra.mxu0 %v3935_v1  ;;  %v3947_v5 = vld [vmem:[#allocation5 + $0x120] ss:$8 sps:$4 sm:$0xff]   ;;  %v3950_v6 = vld [vmem:[#allocation5 + $0x134] ss:$8 sps:$4 sm:$0xff]   ;;  %v3953_v7 = vld [vmem:[#allocation5 + $0x130] ss:$8 sps:$4 sm:$0xff]  }
  0x5f   :  { %1669 = vmatprep.subr.bf16.mxu0 %v3938_v2  ;;  %v3956_v8 = vld [vmem:[#allocation5 + $0x144] ss:$8 sps:$4 sm:$0xff]   ;;  %v3959_v9 = vld [vmem:[#allocation5 + $0x140] ss:$8 sps:$4 sm:$0xff]   ;;  %v3962_v10 = vld [vmem:[#allocation5 + $0x154] ss:$8 sps:$4 sm:$0xff]  }
  0x60   :  { %v3965_v11 = vld [vmem:[#allocation5 + $0x150] ss:$8 sps:$4 sm:$0xff]   ;;  %v3967_v12 = vld [vmem:[#allocation5 + $0x164] ss:$8 sps:$4 sm:$0xff]   ;;  %v3970_v14 = vld [vmem:[#allocation5 + $0x160] ss:$8 sps:$4 sm:$0xff]  }
  0x61   :  { %v3388_v13 = vld [vmem:[#allocation5 + $0x4] ss:$8 sps:$4 sm:$0xff]   ;;  %v3392_v15 = vld [vmem:[#allocation5] ss:$8 sps:$4 sm:$0xff]   ;;  %v3973_v16 = vld [vmem:[#allocation5 + $0x174] ss:$8 sps:$4 sm:$0xff]  }
  0x62   :  { %1670 = vmatpush1.bf16.msra.mxu0 %v3941_v3  ;;  %1474 = vmatprep.subr.bf16.mxu1 %v3388_v13  ;;  %v3396_v17 = vld [vmem:[#allocation2 + $0xc] ss:$28 sps:$4 sm:$0xff]   ;;  %v3397_v18 = vld [vmem:[#allocation5 + $0x14] ss:$8 sps:$4 sm:$0xff]   ;;  %v3976_v19 = vld [vmem:[#allocation5 + $0x170] ss:$8 sps:$4 sm:$0xff]  }
  0x63   :  { %1671 = vmatprep.subr.bf16.mxu0 %v3944_v4  ;;  %1475 = vmatpush1.bf16.msra.mxu1 %v3392_v15  ;;  %v3402_v20 = vld [vmem:[#allocation5 + $0x10] ss:$8 sps:$4 sm:$0xff]   ;;  %v3403_v21 = vld [vmem:[#allocation5 + $0x24] ss:$8 sps:$4 sm:$0xff]   ;;  %v3408_v23 = vld [vmem:[#allocation5 + $0x20] ss:$8 sps:$4 sm:$0xff]  }
  0x64   :  { %1699 = vmatprep.mubr.bf16.mxu0 %v3396_v17  ;;  %1476 = vmatprep.subr.bf16.mxu1 %v3397_v18  ;;  %v3980_v22 = vld [vmem:[#allocation5 + $0x184] ss:$8 sps:$4 sm:$0xff]   ;;  %v3983_v24 = vld [vmem:[#allocation5 + $0x180] ss:$8 sps:$4 sm:$0xff]   ;;  %v3411_v25 = vld [vmem:[#allocation5 + $0x34] ss:$8 sps:$4 sm:$0xff]  }
  0x65   :  { %v3986_v26 = vld [vmem:[#allocation5 + $0x194] ss:$8 sps:$4 sm:$0xff]   ;;  %v3417_v27 = vld [vmem:[#allocation5 + $0x30] ss:$8 sps:$4 sm:$0xff]   ;;  %v3418_v28 = vld [vmem:[#allocation5 + $0x44] ss:$8 sps:$4 sm:$0xff]  }
  0x66   :  { %1672 = vmatpush1.bf16.msra.mxu0 %v3947_v5  ;;  %v3989_v29 = vld [vmem:[#allocation5 + $0x190] ss:$8 sps:$4 sm:$0xff]   ;;  %v3991_v30 = vld [vmem:[#allocation5 + $0x1a4] ss:$8 sps:$4 sm:$0xff]   ;;  %v3423_v31 = vld [vmem:[#allocation5 + $0x40] ss:$8 sps:$4 sm:$0xff]  }
  0x67   :  { %1673 = vmatprep.subr.bf16.mxu0 %v3950_v6  ;;  %1477 = vmatpush1.bf16.msra.mxu1 %v3402_v20  ;;  %v3426_v32 = vld [vmem:[#allocation5 + $0x54] ss:$8 sps:$4 sm:$0xff]   ;;  %v3995_v33 = vld [vmem:[#allocation5 + $0x1a0] ss:$8 sps:$4 sm:$0xff]   ;;  %v3432_v35 = vld [vmem:[#allocation5 + $0x50] ss:$8 sps:$4 sm:$0xff]  }
  0x68   :  { %1478 = vmatprep.subr.bf16.mxu1 %v3403_v21  ;;  %v3997_v34 = vld [vmem:[#allocation5 + $0x1b4] ss:$8 sps:$4 sm:$0xff]   ;;  %v3433_v36 = vld [vmem:[#allocation5 + $0x64] ss:$8 sps:$4 sm:$0xff]   ;;  %v4001_v37 = vld [vmem:[#allocation5 + $0x1b0] ss:$8 sps:$4 sm:$0xff]  }
  0x69   :  { %v4004_v38 = vld [vmem:[#allocation5 + $0x1c4] ss:$8 sps:$4 sm:$0xff]   ;;  %v3438_v39 = vld [vmem:[#allocation5 + $0x60] ss:$8 sps:$4 sm:$0xff]   ;;  %v3441_v40 = vld [vmem:[#allocation5 + $0x74] ss:$8 sps:$4 sm:$0xff]  }
  0x6a   :  { %1674 = vmatpush1.bf16.msra.mxu0 %v3953_v7  ;;  %v4007_v41 = vld [vmem:[#allocation5 + $0x1c0] ss:$8 sps:$4 sm:$0xff]   ;;  %v4010_v42 = vld [vmem:[#allocation5 + $0x1d4] ss:$8 sps:$4 sm:$0xff]   ;;  %v3447_v43 = vld [vmem:[#allocation5 + $0x70] ss:$8 sps:$4 sm:$0xff]  }
  0x6b   :  { %1675 = vmatprep.subr.bf16.mxu0 %v3956_v8  ;;  %1479 = vmatpush1.bf16.msra.mxu1 %v3408_v23  ;;  %v3448_v44 = vld [vmem:[#allocation5 + $0x84] ss:$8 sps:$4 sm:$0xff]   ;;  %v4013_v45 = vld [vmem:[#allocation5 + $0x1d0] ss:$8 sps:$4 sm:$0xff]   ;;  %v3453_v47 = vld [vmem:[#allocation5 + $0x80] ss:$8 sps:$4 sm:$0xff]  }
  0x6c   :  { %1480 = vmatprep.subr.bf16.mxu1 %v3411_v25  ;;  %v4016_v46 = vld [vmem:[#allocation5 + $0x1e4] ss:$8 sps:$4 sm:$0xff]   ;;  %v3456_v48 = vld [vmem:[#allocation5 + $0x94] ss:$8 sps:$4 sm:$0xff]   ;;  %v4019_v49 = vld [vmem:[#allocation5 + $0x1e0] ss:$8 sps:$4 sm:$0xff]  }
  0x6d   :  { %v4021_v50 = vld [vmem:[#allocation5 + $0x1f4] ss:$8 sps:$4 sm:$0xff]   ;;  %v3462_v51 = vld [vmem:[#allocation5 + $0x90] ss:$8 sps:$4 sm:$0xff]   ;;  %v3463_v52 = vld [vmem:[#allocation5 + $0xa4] ss:$8 sps:$4 sm:$0xff]  }
  0x6e   :  { %1676 = vmatpush1.bf16.msra.mxu0 %v3959_v9  ;;  %v4025_v53 = vld [vmem:[#allocation5 + $0x1f0] ss:$8 sps:$4 sm:$0xff]   ;;  %v3401_v54 = vld [vmem:[#allocation5 + $0x204] ss:$8 sps:$4 sm:$0xff]   ;;  %v3468_v55 = vld [vmem:[#allocation5 + $0xa0] ss:$8 sps:$4 sm:$0xff]  }
  0x6f   :  { %1677 = vmatprep.subr.bf16.mxu0 %v3962_v10  ;;  %1481 = vmatpush1.bf16.msra.mxu1 %v3417_v27  ;;  %v3471_v56 = vld [vmem:[#allocation5 + $0xb4] ss:$8 sps:$4 sm:$0xff]   ;;  %v3394_v57 = vld [vmem:[#allocation2 + $0x8] ss:$28 sps:$4 sm:$0xff]   ;;  %v3477_v61 = vld [vmem:[#allocation5 + $0xb0] ss:$8 sps:$4 sm:$0xff]  }
  0x70   :  { %1482 = vmatprep.subr.bf16.mxu1 %v3418_v28  ;;  %v3399_v58 = vld [vmem:[#allocation5 + $0x200] ss:$8 sps:$4 sm:$0xff]   ;;  %v3407_v60 = vld [vmem:[#allocation5 + $0x214] ss:$8 sps:$4 sm:$0xff]   ;;  %v3478_v62 = vld [vmem:[#allocation5 + $0xc4] ss:$8 sps:$4 sm:$0xff]  }
  0x71   :  { %v3409_v59 = vld [vmem:[#allocation2 + $0x44] ss:$28 sps:$4 sm:$0xff]   ;;  %v3405_v63 = vld [vmem:[#allocation5 + $0x210] ss:$8 sps:$4 sm:$0xff]   ;;  %v3486_v17 = vld [vmem:[#allocation5 + $0xd4] ss:$8 sps:$4 sm:$0xff]  }
  0x72   :  { %1678 = vmatpush1.bf16.msra.mxu0 %v3965_v11  ;;  %v3416_v13 = vld [vmem:[#allocation5 + $0x224] ss:$8 sps:$4 sm:$0xff]   ;;  %v3483_v15 = vld [vmem:[#allocation5 + $0xc0] ss:$8 sps:$4 sm:$0xff]   ;;  %v3424_v21 = vld [vmem:[#allocation2 + $0x7c] ss:$28 sps:$4 sm:$0xff]  }
  0x73   :  { %1679 = vmatprep.subr.bf16.mxu0 %v3967_v12  ;;  %1483 = vmatpush1.bf16.msra.mxu1 %v3423_v31  ;;  %v3413_v18 = vld [vmem:[#allocation2 + $0x40] ss:$28 sps:$4 sm:$0xff]   ;;  %v3492_v25 = vld [vmem:[#allocation5 + $0xd0] ss:$8 sps:$4 sm:$0xff]   ;;  %v3493_v27 = vld [vmem:[#allocation5 + $0xe4] ss:$8 sps:$4 sm:$0xff]  }
  0x74   :  { %1484 = vmatprep.subr.bf16.mxu1 %v3426_v32  ;;  %v3414_v20 = vld [vmem:[#allocation5 + $0x220] ss:$8 sps:$4 sm:$0xff]   ;;  %v3422_v23 = vld [vmem:[#allocation5 + $0x234] ss:$8 sps:$4 sm:$0xff]   ;;  %v3420_v31 = vld [vmem:[#allocation5 + $0x230] ss:$8 sps:$4 sm:$0xff]  }
  0x75   :  { %v3510_v28 = vld [vmem:[#allocation2 + $0x4] ss:$28 sps:$4 sm:$0xff]   ;;  %s3839_s4 = smov [#allocation11]  }
  0x76   :  { %1680 = vmatpush1.bf16.msra.mxu0 %v3970_v14  ;;  %v3431_v32 = vld [vmem:[#allocation5 + $0x244] ss:$8 sps:$4 sm:$0xff]   ;;  %1506 = vmatprep.mubr.bf16.mxu1 %v3510_v28  ;;  %s2675_s8 = sshll.u32 %s3839_s4, 4  ;;  %s2676_s8 = int_to_ptr.vmem [resolvable:$true] %s2675_s8 }
  0x77   :  { %1681 = vmatprep.subr.bf16.mxu0 %v3973_v16  ;;  %1485 = vmatpush1.bf16.msra.mxu1 %v3432_v35  ;;  %v3498_v35 = vld [vmem:[#allocation5 + $0xe0] ss:$8 sps:$4 sm:$0xff]   ;;  %v3506_v28 = vld [vmem:[#allocation5 + $0x2e4] ss:$8 sps:$4 sm:$0xff]   ;;  %s3797_s9 = scalar_lea.vmem %s2676_s8, 4096  ;;  %p3802_p13 = scmp.lt.s32.totalorder %s2676_s8, %s2676_s8 }
  0x78   :  { %1486 = vmatprep.subr.bf16.mxu1 %v3433_v36  ;;  %v3501_v36 = vld [vmem:[#allocation5 + $0xf4] ss:$8 sps:$4 sm:$0xff]   ;;  %p3798_p12 = scmp.ne.s32.totalorder %s2676_s8, %s3797_s9  ;;  %p3803_p0 = scmp.lt.s32.totalorder %s3797_s9, %s3797_s9 }
  0x7a   :  { %1682 = vmatpush1.bf16.msra.mxu0 %v3976_v19  ;;  %p3804_p1 = por %p3803_p0, %p3802_p13 }
  0x7b   :  { %1683 = vmatprep.subr.bf16.mxu0 %v3980_v22  ;;  %1487 = vmatpush1.bf16.msra.mxu1 %v3438_v39  ;;  %v3428_v39 = vld [vmem:[#allocation2 + $0x78] ss:$28 sps:$4 sm:$0xff]  }
  0x7c   :  { %1488 = vmatprep.subr.bf16.mxu1 %v3441_v40  ;;  %v3429_v40 = vld [vmem:[#allocation5 + $0x240] ss:$8 sps:$4 sm:$0xff]   ;;  %p3805_p2 = pnand %p3804_p1, %p3798_p12 }
  0x7e   :  { %1684 = vmatpush1.bf16.msra.mxu0 %v3983_v24 }
  0x7f   :  { %1685 = vmatprep.subr.bf16.mxu0 %v3986_v26  ;;  %1489 = vmatpush1.bf16.msra.mxu1 %v3447_v43  ;;  %v3437_v43 = vld [vmem:[#allocation5 + $0x254] ss:$8 sps:$4 sm:$0xff]  }
  0x80   :  { %1490 = vmatprep.subr.bf16.mxu1 %v3448_v44  ;;  %v3439_v44 = vld [vmem:[#allocation2 + $0xb4] ss:$28 sps:$4 sm:$0xff]  }
  0x82   :  { %1686 = vmatpush1.bf16.msra.mxu0 %v3989_v29 }
  0x83   :  { %1687 = vmatprep.subr.bf16.mxu0 %v3991_v30  ;;  %1491 = vmatpush1.bf16.msra.mxu1 %v3453_v47  ;;  %v3507_v47 = vld [vmem:[#allocation5 + $0xf0] ss:$8 sps:$4 sm:$0xff]  }
  0x84   :  { %1492 = vmatprep.subr.bf16.mxu1 %v3456_v48  ;;  %v3435_v48 = vld [vmem:[#allocation5 + $0x250] ss:$8 sps:$4 sm:$0xff]  }
  0x86   :  { %1688 = vmatpush1.bf16.msra.mxu0 %v3995_v33 }
  0x87   :  { %1689 = vmatprep.subr.bf16.mxu0 %v3997_v34  ;;  %1493 = vmatpush1.bf16.msra.mxu1 %v3462_v51  ;;  %v3446_v51 = vld [vmem:[#allocation5 + $0x264] ss:$8 sps:$4 sm:$0xff]  }
  0x88   :  { %1494 = vmatprep.subr.bf16.mxu1 %v3463_v52  ;;  %v3508_v52 = vld [vmem:[#allocation2] ss:$28 sps:$4 sm:$0xff]  }
  0x8a   :  { %1690 = vmatpush1.bf16.msra.mxu0 %v4001_v37 }
  0x8b   :  { %1691 = vmatprep.subr.bf16.mxu0 %v4004_v38  ;;  %1495 = vmatpush1.bf16.msra.mxu1 %v3468_v55  ;;  %v3443_v55 = vld [vmem:[#allocation2 + $0xb0] ss:$28 sps:$4 sm:$0xff]  }
  0x8c   :  { %1496 = vmatprep.subr.bf16.mxu1 %v3471_v56  ;;  %v3444_v56 = vld [vmem:[#allocation5 + $0x260] ss:$8 sps:$4 sm:$0xff]  }
  0x8e   :  { %1692 = vmatpush1.bf16.msra.mxu0 %v4007_v41 }
  0x8f   :  { %1693 = vmatprep.subr.bf16.mxu0 %v4010_v42  ;;  %1497 = vmatpush1.bf16.msra.mxu1 %v3477_v61  ;;  %v3522_v61 = vld [vmem:[#allocation2 + $0x38] ss:$28 sps:$4 sm:$0xff]  }
  0x90   :  { %1498 = vmatprep.subr.bf16.mxu1 %v3478_v62  ;;  %v3458_v62 = vld [vmem:[#allocation2 + $0xe8] ss:$28 sps:$4 sm:$0xff]  }
  0x92   :  { %1694 = vmatpush1.bf16.msra.mxu0 %v4013_v45 }
  0x93   :  { %1695 = vmatprep.subr.bf16.mxu0 %v4016_v46  ;;  %1499 = vmatpush1.bf16.msra.mxu1 %v3483_v15  ;;  %v3476_v15 = vld [vmem:[#allocation5 + $0x2a4] ss:$8 sps:$4 sm:$0xff]  }
  0x94   :  { %1500 = vmatprep.subr.bf16.mxu1 %v3486_v17  ;;  %v3535_v17 = vld [vmem:[#allocation2 + $0xac] ss:$28 sps:$4 sm:$0xff]  }
  0x96   :  { %1696 = vmatpush1.bf16.msra.mxu0 %v4019_v49 }
  0x97   :  { %1697 = vmatprep.subr.bf16.mxu0 %v4021_v50  ;;  %1501 = vmatpush1.bf16.msra.mxu1 %v3492_v25  ;;  %v3489_v25 = vld [vmem:[#allocation5 + $0x2c0] ss:$8 sps:$4 sm:$0xff]  }
  0x98   :  { %1502 = vmatprep.subr.bf16.mxu1 %v3493_v27  ;;  %v3499_v27 = vld [vmem:[#allocation2 + $0x194] ss:$28 sps:$4 sm:$0xff]  }
  0x9a   :  { %1698 = vmatpush1.bf16.msra.mxu0 %v4025_v53 }
  0x9b   :  { %1860 = vmatprep.subr.bf16.mxu0 %v3401_v54  ;;  %1503 = vmatpush1.bf16.msra.mxu1 %v3498_v35  ;;  %v3520_v54 = vld [vmem:[#allocation2 + $0x3c] ss:$28 sps:$4 sm:$0xff]   ;;  %v3516_v35 = vld [vmem:[#allocation2 + $0x14] ss:$28 sps:$4 sm:$0xff]  }
  0x9c   :  { %1504 = vmatprep.subr.bf16.mxu1 %v3501_v36  ;;  %v3519_v36 = vld [vmem:[#allocation5 + $0x304] ss:$8 sps:$4 sm:$0xff]  }
  0x9d   :  { %1700 = vmatmul.mubr.bf16.vlgmr.msra.gmra.mrb[0].mxu0 %v3394_v57  ;;  %v3454_v57 = vld [vmem:[#allocation2 + $0xec] ss:$28 sps:$4 sm:$0xff]  }
  0x9e   :  { %1861 = vmatpush1.bf16.msra.mxu0 %v3399_v58  ;;  %1709 = vmatprep.mubr.bf16.mxu0 %v3409_v59  ;;  %v3452_v58 = vld [vmem:[#allocation5 + $0x274] ss:$8 sps:$4 sm:$0xff]   ;;  %v3450_v59 = vld [vmem:[#allocation5 + $0x270] ss:$8 sps:$4 sm:$0xff]  }
  0x9f   :  { %1862 = vmatprep.subr.bf16.mxu0 %v3407_v60  ;;  %1505 = vmatpush1.bf16.msra.mxu1 %v3507_v47  ;;  %v3461_v60 = vld [vmem:[#allocation5 + $0x284] ss:$8 sps:$4 sm:$0xff]  }
  0xa0   :  { %3042 = vmatprep.subr.bf16.mxu1 %v3933_v0  ;;  %v3526_v0 = vld [vmem:[#allocation2 + $0x74] ss:$28 sps:$4 sm:$0xff]   ;;  %v3525_v47 = vld [vmem:[#allocation2 + $0x48] ss:$28 sps:$4 sm:$0xff]  }
  0xa2   :  { %1863 = vmatpush1.bf16.msra.mxu0 %v3405_v63  ;;  %1507 = vmatmul.mubr.bf16.vlgmr.msra.gmra.mrb[0].mxu1 %v3508_v52  ;;  %v3459_v63 = vld [vmem:[#allocation5 + $0x280] ss:$8 sps:$4 sm:$0xff]   ;;  %v3564_v52 = vld [vmem:[#allocation5 + $0x334] ss:$8 sps:$4 sm:$0xff]  }
  0xa3   :  { %1864 = vmatprep.subr.bf16.mxu0 %v3416_v13  ;;  %1516 = vmatprep.mubr.bf16.mxu1 %v3520_v54  ;;  %v3469_v13 = vld [vmem:[#allocation2 + $0x124] ss:$28 sps:$4 sm:$0xff]  }
  0xa4   :  { %3058 = vmatpush1.bf16.msra.mxu1 %v3935_v1  ;;  %v3467_v1 = vld [vmem:[#allocation5 + $0x294] ss:$8 sps:$4 sm:$0xff]   ;;  %v3571_v54 = vld [vmem:[#allocation2 + $0x1c4] ss:$28 sps:$4 sm:$0xff]  }
  0xa5   :  { %1710 = vmatmul.mubr.bf16.gmra.mrb[4].mxu0 %v3413_v18  ;;  %3043 = vmatprep.subr.bf16.mxu1 %v3938_v2  ;;  %v3465_v2 = vld [vmem:[#allocation5 + $0x290] ss:$8 sps:$4 sm:$0xff]   ;;  %v3474_v18 = vld [vmem:[#allocation5 + $0x2a0] ss:$8 sps:$4 sm:$0xff]  }
  0xa6   :  { %1865 = vmatpush1.bf16.msra.mxu0 %v3414_v20  ;;  %1719 = vmatprep.mubr.bf16.mxu0 %v3424_v21  ;;  %v3484_v20 = vld [vmem:[#allocation2 + $0x15c] ss:$28 sps:$4 sm:$0xff]   ;;  %v3491_v21 = vld [vmem:[#allocation5 + $0x2c4] ss:$8 sps:$4 sm:$0xff]  }
  0xa7   :  { %1866 = vmatprep.subr.bf16.mxu0 %v3422_v23  ;;  %v3541_v23 = vld [vmem:[#allocation2 + $0xe4] ss:$28 sps:$4 sm:$0xff]  }
  0xa8   :  { %3059 = vmatpush1.bf16.msra.mxu1 %v3941_v3  ;;  %v3528_v3 = vld [vmem:[#allocation2 + $0x70] ss:$28 sps:$4 sm:$0xff]  }
  0xa9   :  { %3044 = vmatprep.subr.bf16.mxu1 %v3944_v4  ;;  %v3473_v4 = vld [vmem:[#allocation2 + $0x120] ss:$28 sps:$4 sm:$0xff]  }
  0xaa   :  { %1867 = vmatpush1.bf16.msra.mxu0 %v3420_v31  ;;  %1517 = vmatmul.mubr.bf16.gmra.mrb[4].mxu1 %v3522_v61  ;;  %v3550_v31 = vld [vmem:[#allocation2 + $0x11c] ss:$28 sps:$4 sm:$0xff]   ;;  %v3607_v61 = vld [vmem:[#allocation5 + $0x360] ss:$8 sps:$4 sm:$0xff]  }
  0xab   :  { %1868 = vmatprep.subr.bf16.mxu0 %v3431_v32  ;;  %1526 = vmatprep.mubr.bf16.mxu1 %v3526_v0  ;;  %v3504_v32 = vld [vmem:[#allocation5 + $0x2e0] ss:$8 sps:$4 sm:$0xff]   ;;  %v3586_v0 = vld [vmem:[#allocation2 + $0x234] ss:$28 sps:$4 sm:$0xff]  }
  0xac   :  { %3060 = vmatpush1.bf16.msra.mxu1 %v3947_v5  ;;  %v3482_v5 = vld [vmem:[#allocation5 + $0x2b4] ss:$8 sps:$4 sm:$0xff]  }
  0xad   :  { %1720 = vmatmul.mubr.bf16.gmra.mrb[8].mxu0 %v3428_v39  ;;  %3045 = vmatprep.subr.bf16.mxu1 %v3950_v6  ;;  %v3480_v6 = vld [vmem:[#allocation5 + $0x2b0] ss:$8 sps:$4 sm:$0xff]  }
  0xae   :  { %1869 = vmatpush1.bf16.msra.mxu0 %v3429_v40  ;;  %1729 = vmatprep.mubr.bf16.mxu0 %v3439_v44  ;;  %v3556_v39 = vld [vmem:[#allocation2 + $0x154] ss:$28 sps:$4 sm:$0xff]   ;;  %v3517_v40 = vld [vmem:[#allocation5 + $0x300] ss:$8 sps:$4 sm:$0xff]   ;;  %v3549_v44 = vld [vmem:[#allocation5 + $0x324] ss:$8 sps:$4 sm:$0xff]  }
  0xaf   :  { %1870 = vmatprep.subr.bf16.mxu0 %v3437_v43  ;;  %v3523_v43 = vld [vmem:[#allocation2 + $0x4c] ss:$28 sps:$4 sm:$0xff]  }
  0xb0   :  { %3061 = vmatpush1.bf16.msra.mxu1 %v3953_v7  ;;  %v3537_v7 = vld [vmem:[#allocation2 + $0xa8] ss:$28 sps:$4 sm:$0xff]  }
  0xb1   :  { %3046 = vmatprep.subr.bf16.mxu1 %v3956_v8  ;;  %v3488_v8 = vld [vmem:[#allocation2 + $0x158] ss:$28 sps:$4 sm:$0xff]  }
  0xb2   :  { %1871 = vmatpush1.bf16.msra.mxu0 %v3435_v48  ;;  %1527 = vmatmul.mubr.bf16.gmra.mrb[8].mxu1 %v3528_v3  ;;  %v3529_v48 = vld [vmem:[#allocation2 + $0x84] ss:$28 sps:$4 sm:$0xff]  }
  0xb3   :  { %1872 = vmatprep.subr.bf16.mxu0 %v3446_v51  ;;  %1536 = vmatprep.mubr.bf16.mxu1 %v3535_v17  ;;  %v3547_v51 = vld [vmem:[#allocation5 + $0x320] ss:$8 sps:$4 sm:$0xff]  }
  0xb4   :  { %3062 = vmatpush1.bf16.msra.mxu1 %v3959_v9  ;;  %v3497_v9 = vld [vmem:[#allocation5 + $0x2d4] ss:$8 sps:$4 sm:$0xff]   ;;  %v3601_v3 = vld [vmem:[#allocation2 + $0x2a4] ss:$28 sps:$4 sm:$0xff]  }
  0xb5   :  { %1730 = vmatmul.mubr.bf16.gmra.mrb[12].mxu0 %v3443_v55  ;;  %3047 = vmatprep.subr.bf16.mxu1 %v3962_v10  ;;  %v3495_v10 = vld [vmem:[#allocation5 + $0x2d0] ss:$8 sps:$4 sm:$0xff]   ;;  %v3579_v55 = vld [vmem:[#allocation5 + $0x344] ss:$8 sps:$4 sm:$0xff]   ;;  %v3561_v17 = vld [vmem:[#allocation2 + $0x160] ss:$28 sps:$4 sm:$0xff]  }
  0xb6   :  { %1873 = vmatpush1.bf16.msra.mxu0 %v3444_v56  ;;  %1739 = vmatprep.mubr.bf16.mxu0 %v3454_v57  ;;  %v3531_v56 = vld [vmem:[#allocation2 + $0x80] ss:$28 sps:$4 sm:$0xff]  }
  0xb7   :  { %1874 = vmatprep.subr.bf16.mxu0 %v3452_v58  ;;  %v3577_v57 = vld [vmem:[#allocation5 + $0x340] ss:$8 sps:$4 sm:$0xff]   ;;  %v3592_v58 = vld [vmem:[#allocation5 + $0x350] ss:$8 sps:$4 sm:$0xff]  }
  0xb8   :  { %3063 = vmatpush1.bf16.msra.mxu1 %v3965_v11  ;;  %v3543_v11 = vld [vmem:[#allocation2 + $0xe0] ss:$28 sps:$4 sm:$0xff]  }
  0xb9   :  { %3048 = vmatprep.subr.bf16.mxu1 %v3967_v12  ;;  %v3503_v12 = vld [vmem:[#allocation2 + $0x190] ss:$28 sps:$4 sm:$0xff]  }
  0xba   :  { %1875 = vmatpush1.bf16.msra.mxu0 %v3450_v59  ;;  %1537 = vmatmul.mubr.bf16.gmra.mrb[12].mxu1 %v3537_v7  ;;  %v3609_v59 = vld [vmem:[#allocation5 + $0x364] ss:$8 sps:$4 sm:$0xff]   ;;  %v3616_v7 = vld [vmem:[#allocation2 + $0x314] ss:$28 sps:$4 sm:$0xff]  }
  0xbb   :  { %1876 = vmatprep.subr.bf16.mxu0 %v3461_v60  ;;  %1546 = vmatprep.mubr.bf16.mxu1 %v3541_v23  ;;  %v3540_v60 = vld [vmem:[#allocation2 + $0xb8] ss:$28 sps:$4 sm:$0xff]   ;;  %v3576_v23 = vld [vmem:[#allocation2 + $0x1d0] ss:$28 sps:$4 sm:$0xff]  }
  0xbc   :  { %3064 = vmatpush1.bf16.msra.mxu1 %v3970_v14  ;;  %v3513_v14 = vld [vmem:[#allocation5 + $0x2f4] ss:$8 sps:$4 sm:$0xff]  }
  0xbd   :  { %1740 = vmatmul.mubr.bf16.gmra.mrb[16].mxu0 %v3458_v62  ;;  %3049 = vmatprep.subr.bf16.mxu1 %v3973_v16  ;;  %v3511_v16 = vld [vmem:[#allocation5 + $0x2f0] ss:$8 sps:$4 sm:$0xff]  }
  0xbe   :  { %1877 = vmatpush1.bf16.msra.mxu0 %v3459_v63  ;;  %1749 = vmatprep.mubr.bf16.mxu0 %v3469_v13  ;;  %v3546_v62 = vld [vmem:[#allocation2 + $0xf0] ss:$28 sps:$4 sm:$0xff]  }
  0xbf   :  { %1878 = vmatprep.subr.bf16.mxu0 %v3467_v1  ;;  %v3553_v63 = vld [vmem:[#allocation2 + $0x12c] ss:$28 sps:$4 sm:$0xff]  }
  0xc0   :  { %3065 = vmatpush1.bf16.msra.mxu1 %v3976_v19  ;;  %v3552_v19 = vld [vmem:[#allocation2 + $0x118] ss:$28 sps:$4 sm:$0xff]   ;;  %v3595_v13 = vld [vmem:[#allocation2 + $0x26c] ss:$28 sps:$4 sm:$0xff]  }
  0xc1   :  { %3050 = vmatprep.subr.bf16.mxu1 %v3980_v22  ;;  %v3514_v22 = vld [vmem:[#allocation2 + $0x10] ss:$28 sps:$4 sm:$0xff]   ;;  %v3555_v1 = vld [vmem:[#allocation2 + $0x128] ss:$28 sps:$4 sm:$0xff]  }
  0xc2   :  { %1879 = vmatpush1.bf16.msra.mxu0 %v3465_v2  ;;  %1547 = vmatmul.mubr.bf16.gmra.mrb[16].mxu1 %v3543_v11  ;;  %v3559_v2 = vld [vmem:[#allocation2 + $0x164] ss:$28 sps:$4 sm:$0xff]   ;;  %v3633_v11 = vld [vmem:[#allocation2 + $0x1cc] ss:$28 sps:$4 sm:$0xff]  }
  0xc3   :  { %1880 = vmatprep.subr.bf16.mxu0 %v3476_v15  ;;  %1556 = vmatprep.mubr.bf16.mxu1 %v3550_v31  ;;  %v3597_v15 = vld [vmem:[#allocation2 + $0x268] ss:$28 sps:$4 sm:$0xff]   ;;  %v3591_v31 = vld [vmem:[#allocation2 + $0x240] ss:$28 sps:$4 sm:$0xff]  }
  0xc4   :  { %3066 = vmatpush1.bf16.msra.mxu1 %v3983_v24  ;;  %v3534_v24 = vld [vmem:[#allocation5 + $0x314] ss:$8 sps:$4 sm:$0xff]  }
  0xc5   :  { %1750 = vmatmul.mubr.bf16.gmra.mrb[20].mxu0 %v3473_v4  ;;  %3051 = vmatprep.subr.bf16.mxu1 %v3986_v26  ;;  %v3532_v26 = vld [vmem:[#allocation5 + $0x310] ss:$8 sps:$4 sm:$0xff]  }
  0xc6   :  { %1881 = vmatpush1.bf16.msra.mxu0 %v3474_v18  ;;  %1759 = vmatprep.mubr.bf16.mxu0 %v3484_v20  ;;  %v3568_v4 = vld [vmem:[#allocation2 + $0x19c] ss:$28 sps:$4 sm:$0xff]  }
  0xc7   :  { %1882 = vmatprep.subr.bf16.mxu0 %v3482_v5  ;;  %v3603_v18 = vld [vmem:[#allocation2 + $0x2a0] ss:$28 sps:$4 sm:$0xff]   ;;  %v3570_v5 = vld [vmem:[#allocation2 + $0x198] ss:$28 sps:$4 sm:$0xff]  }
  0xc8   :  { %3067 = vmatpush1.bf16.msra.mxu1 %v3989_v29  ;;  %v3558_v29 = vld [vmem:[#allocation2 + $0x150] ss:$28 sps:$4 sm:$0xff]   ;;  %v3610_v20 = vld [vmem:[#allocation2 + $0x2dc] ss:$28 sps:$4 sm:$0xff]  }
  0xc9   :  { %3052 = vmatprep.subr.bf16.mxu1 %v3991_v30  ;;  %v3565_v30 = vld [vmem:[#allocation2 + $0x18c] ss:$28 sps:$4 sm:$0xff]  }
  0xca   :  { %1883 = vmatpush1.bf16.msra.mxu0 %v3480_v6  ;;  %1557 = vmatmul.mubr.bf16.gmra.mrb[20].mxu1 %v3552_v19  ;;  %v3574_v6 = vld [vmem:[#allocation2 + $0x1d4] ss:$28 sps:$4 sm:$0xff]   ;;  %v3639_v19 = vld [vmem:[#allocation2 + $0x23c] ss:$28 sps:$4 sm:$0xff]  }
  0xcb   :  { %1884 = vmatprep.subr.bf16.mxu0 %v3491_v21  ;;  %1566 = vmatprep.mubr.bf16.mxu1 %v3556_v39  ;;  %v3612_v21 = vld [vmem:[#allocation2 + $0x2d8] ss:$28 sps:$4 sm:$0xff]   ;;  %v3606_v39 = vld [vmem:[#allocation2 + $0x2b0] ss:$28 sps:$4 sm:$0xff]  }
  0xcc   :  { %3068 = vmatpush1.bf16.msra.mxu1 %v3995_v33  ;;  %v3562_v33 = vld [vmem:[#allocation5 + $0x330] ss:$8 sps:$4 sm:$0xff]  }
  0xcd   :  { %1760 = vmatmul.mubr.bf16.gmra.mrb[24].mxu0 %v3488_v8  ;;  %3053 = vmatprep.subr.bf16.mxu1 %v3997_v34  ;;  %v3567_v34 = vld [vmem:[#allocation2 + $0x188] ss:$28 sps:$4 sm:$0xff]  }
  0xce   :  { %1885 = vmatpush1.bf16.msra.mxu0 %v3489_v25  ;;  %1769 = vmatprep.mubr.bf16.mxu0 %v3499_v27  ;;  %v3583_v8 = vld [vmem:[#allocation2 + $0x20c] ss:$28 sps:$4 sm:$0xff]  }
  0xcf   :  { %1886 = vmatprep.subr.bf16.mxu0 %v3497_v9  ;;  %v3618_v25 = vld [vmem:[#allocation2 + $0x310] ss:$28 sps:$4 sm:$0xff]   ;;  %v3585_v9 = vld [vmem:[#allocation2 + $0x208] ss:$28 sps:$4 sm:$0xff]  }
  0xd0   :  { %3069 = vmatpush1.bf16.msra.mxu1 %v4001_v37  ;;  %v3538_v37 = vld [vmem:[#allocation2 + $0xbc] ss:$28 sps:$4 sm:$0xff]   ;;  %v3625_v27 = vld [vmem:[#allocation2 + $0x34c] ss:$28 sps:$4 sm:$0xff]  }
  0xd1   :  { %3054 = vmatprep.subr.bf16.mxu1 %v4004_v38  ;;  %v3594_v38 = vld [vmem:[#allocation5 + $0x354] ss:$8 sps:$4 sm:$0xff]  }
  0xd2   :  { %1887 = vmatpush1.bf16.msra.mxu0 %v3495_v10  ;;  %1567 = vmatmul.mubr.bf16.gmra.mrb[24].mxu1 %v3558_v29  ;;  %v3589_v10 = vld [vmem:[#allocation2 + $0x244] ss:$28 sps:$4 sm:$0xff]   ;;  %v3647_v29 = vld [vmem:[#allocation2 + $0x2ac] ss:$28 sps:$4 sm:$0xff]  }
  0xd3   :  { %1888 = vmatprep.subr.bf16.mxu0 %v3506_v28  ;;  %1576 = vmatprep.mubr.bf16.mxu1 %v3565_v30  ;;  %v3627_v28 = vld [vmem:[#allocation2 + $0x348] ss:$28 sps:$4 sm:$0xff]   ;;  %v3628_v30 = vld [vmem:[#allocation2 + $0x35c] ss:$28 sps:$4 sm:$0xff]  }
  0xd4   :  { %3070 = vmatpush1.bf16.msra.mxu1 %v4007_v41  ;;  %v3573_v41 = vld [vmem:[#allocation2 + $0x1c0] ss:$28 sps:$4 sm:$0xff]  }
  0xd5   :  { %1770 = vmatmul.mubr.bf16.gmra.mrb[28].mxu0 %v3503_v12  ;;  %3055 = vmatprep.subr.bf16.mxu1 %v4010_v42  ;;  %v3580_v42 = vld [vmem:[#allocation2 + $0x1fc] ss:$28 sps:$4 sm:$0xff]  }
  0xd6   :  { %1889 = vmatpush1.bf16.msra.mxu0 %v3504_v32  ;;  %1892 = vmatprep.mubr.bf16.mxu0 %v3516_v35  ;;  %v3598_v12 = vld [vmem:[#allocation2 + $0x27c] ss:$28 sps:$4 sm:$0xff]   ;;  %v3631_v32 = vld [vmem:[#allocation2 + $0x1c8] ss:$28 sps:$4 sm:$0xff]  }
  0xd7   :  { %1890 = vmatprep.subr.bf16.mxu0 %v3513_v14  ;;  %v3635_v35 = vld [vmem:[#allocation2 + $0x204] ss:$28 sps:$4 sm:$0xff]   ;;  %v3600_v14 = vld [vmem:[#allocation2 + $0x278] ss:$28 sps:$4 sm:$0xff]  }
  0xd8   :  { %3071 = vmatpush1.bf16.msra.mxu1 %v4013_v45  ;;  %v3544_v45 = vld [vmem:[#allocation2 + $0xf4] ss:$28 sps:$4 sm:$0xff]  }
  0xd9   :  { %3056 = vmatprep.subr.bf16.mxu1 %v4016_v46  ;;  %v3624_v46 = vld [vmem:[#allocation5 + $0x374] ss:$8 sps:$4 sm:$0xff]  }
  0xda   :  { %1891 = vmatpush1.bf16.msra.mxu0 %v3511_v16  ;;  %1577 = vmatmul.mubr.bf16.gmra.mrb[28].mxu1 %v3567_v34  ;;  %v3604_v16 = vld [vmem:[#allocation2 + $0x2b4] ss:$28 sps:$4 sm:$0xff]   ;;  %v3672_v34 = vld [vmem:[#allocation8] sm:$0xff]  }
  0xdb   :  { %2053 = vmatprep.subr.bf16.mxu0 %v3519_v36  ;;  %1586 = vmatprep.mubr.bf16.mxu1 %v3571_v54  ;;  %v3637_v36 = vld [vmem:[#allocation2 + $0x200] ss:$28 sps:$4 sm:$0xff]   ;;  %v3838_v54 = vmov 0  }
  0xdc   :  { %3072 = vmatpush1.bf16.msra.mxu1 %v4019_v49  ;;  %v3582_v49 = vld [vmem:[#allocation2 + $0x1f8] ss:$28 sps:$4 sm:$0xff]  }
  0xdd   :  { %1893 = vmatmul.mubr.bf16.vlgmr.msra.gmra.mrb[0].mxu0 %v3514_v22  ;;  %3057 = vmatprep.subr.bf16.mxu1 %v4021_v50  ;;  %v3622_v50 = vld [vmem:[#allocation5 + $0x370] ss:$8 sps:$4 sm:$0xff]   ;;  %v3613_v22 = vld [vmem:[#allocation2 + $0x2ec] ss:$28 sps:$4 sm:$0xff]  }
  0xde   :  { %2054 = vmatpush1.bf16.msra.mxu0 %v3517_v40  ;;  %1902 = vmatprep.mubr.bf16.mxu0 %v3523_v43  ;;  %v3641_v40 = vld [vmem:[#allocation2 + $0x238] ss:$28 sps:$4 sm:$0xff]  }
  0xdf   :  { %2055 = vmatprep.subr.bf16.mxu0 %v3534_v24  ;;  %v3643_v43 = vld [vmem:[#allocation2 + $0x274] ss:$28 sps:$4 sm:$0xff]   ;;  %v3615_v24 = vld [vmem:[#allocation2 + $0x2e8] ss:$28 sps:$4 sm:$0xff]  }
  0xe0   :  { %3073 = vmatpush1.bf16.msra.mxu1 %v4025_v53  ;;  %v3588_v53 = vld [vmem:[#allocation2 + $0x230] ss:$28 sps:$4 sm:$0xff]  }
  0xe2   :  { %2056 = vmatpush1.bf16.msra.mxu0 %v3532_v26  ;;  %1587 = vmatmul.mubr.bf16.gmra.mrb[32].mxu1 %v3573_v41  ;;  %v3619_v26 = vld [vmem:[#allocation2 + $0x324] ss:$28 sps:$4 sm:$0xff]   ;;  %v3675_v41 = vld [vmem:[#allocation8 + $0x50] sm:$0xff]  }
  0xe3   :  { %2057 = vmatprep.subr.bf16.mxu0 %v3549_v44  ;;  %1596 = vmatprep.mubr.bf16.mxu1 %v3580_v42  ;;  %v3645_v44 = vld [vmem:[#allocation2 + $0x270] ss:$28 sps:$4 sm:$0xff]  }
  0xe4   :  { %v3676_v42 = vld [vmem:[#allocation8 + $0x10] sm:$0xff]  }
  0xe5   :  { %1903 = vmatmul.mubr.bf16.gmra.mrb[4].mxu0 %v3525_v47  ;;  %v3621_v47 = vld [vmem:[#allocation2 + $0x320] ss:$28 sps:$4 sm:$0xff]  }
  0xe6   :  { %1912 = vmatprep.mubr.bf16.mxu0 %v3529_v48  ;;  %2058 = vmatpush1.bf16.msra.mxu0 %v3547_v51  ;;  %v3649_v48 = vld [vmem:[#allocation2 + $0x2a8] ss:$28 sps:$4 sm:$0xff]  }
  0xe7   :  { %2059 = vmatprep.subr.bf16.mxu0 %v3564_v52  ;;  %v3651_v51 = vld [vmem:[#allocation2 + $0x2e4] ss:$28 sps:$4 sm:$0xff]   ;;  %v3630_v52 = vld [vmem:[#allocation2 + $0x358] ss:$28 sps:$4 sm:$0xff]  }
  0xea   :  { %2060 = vmatpush1.bf16.msra.mxu0 %v3562_v33  ;;  %1597 = vmatmul.mubr.bf16.gmra.mrb[36].mxu1 %v3582_v49  ;;  %v3671_v33 = vld [vmem:[#allocation8 + $0x40] sm:$0xff]  }
  0xeb   :  { %2061 = vmatprep.subr.bf16.mxu0 %v3579_v55  ;;  %1606 = vmatprep.mubr.bf16.mxu1 %v3586_v0  ;;  %v3653_v55 = vld [vmem:[#allocation2 + $0x2e0] ss:$28 sps:$4 sm:$0xff]   ;;  %v3681_v0 = vld [vmem:[#allocation8 + $0x68] sm:$0xff]  }
  0xec   :  { %2930 = vmatprep.subr.bf16.mxu1 %v3671_v33  ;;  %v3680_v49 = vld [vmem:[#allocation8 + $0x20] sm:$0xff]  }
  0xed   :  { %1913 = vmatmul.mubr.bf16.gmra.mrb[8].mxu0 %v3531_v56  ;;  %v3673_v56 = vld [vmem:[#allocation8 + $0x48] sm:$0xff]  }
  0xee   :  { %1922 = vmatprep.mubr.bf16.mxu0 %v3538_v37  ;;  %2062 = vmatpush1.bf16.msra.mxu0 %v3577_v57  ;;  %v3655_v37 = vld [vmem:[#allocation2 + $0x31c] ss:$28 sps:$4 sm:$0xff]   ;;  %v3674_v57 = vld [vmem:[#allocation8 + $0x8] sm:$0xff]  }
  0xef   :  { %2063 = vmatprep.subr.bf16.mxu0 %v3594_v38  ;;  %v3634_v38 = vld [vmem:[#allocation2 + $0x18] ss:$28 sps:$4 sm:$0xff]  }
  0xf2   :  { %2064 = vmatpush1.bf16.msra.mxu0 %v3592_v58  ;;  %1607 = vmatmul.mubr.bf16.gmra.mrb[40].mxu1 %v3588_v53  ;;  %v3677_v58 = vld [vmem:[#allocation8 + $0x58] sm:$0xff]   ;;  %v3683_v53 = vld [vmem:[#allocation8 + $0x70] sm:$0xff]  }
  0xf3   :  { %2065 = vmatprep.subr.bf16.mxu0 %v3609_v59  ;;  %1616 = vmatprep.mubr.bf16.mxu1 %v3595_v13  ;;  %v3657_v59 = vld [vmem:[#allocation2 + $0x318] ss:$28 sps:$4 sm:$0xff]   ;;  %v3646_v13 = vld [vmem:[#allocation2 + $0xc0] ss:$28 sps:$4 sm:$0xff]  }
  0xf5   :  { %1923 = vmatmul.mubr.bf16.gmra.mrb[12].mxu0 %v3540_v60  ;;  %v3659_v60 = vld [vmem:[#allocation2 + $0x354] ss:$28 sps:$4 sm:$0xff]  }
  0xf6   :  { %1932 = vmatprep.mubr.bf16.mxu0 %v3544_v45  ;;  %2066 = vmatpush1.bf16.msra.mxu0 %v3607_v61  ;;  %v3678_v45 = vld [vmem:[#allocation8 + $0x18] sm:$0xff]   ;;  %v3638_v61 = vld [vmem:[#allocation2 + $0x50] ss:$28 sps:$4 sm:$0xff]  }
  0xf7   :  { %2067 = vmatprep.subr.bf16.mxu0 %v3624_v46  ;;  %v3679_v46 = vld [vmem:[#allocation8 + $0x60] sm:$0xff]  }
  0xfa   :  { %2068 = vmatpush1.bf16.msra.mxu0 %v3622_v50  ;;  %1617 = vmatmul.mubr.bf16.gmra.mrb[44].mxu1 %v3597_v15  ;;  %v3661_v50 = vld [vmem:[#allocation2 + $0x350] ss:$28 sps:$4 sm:$0xff]  }
  0xfb   :  { %1626 = vmatprep.mubr.bf16.mxu1 %v3601_v3 }
  0xfd   :  { %1933 = vmatmul.mubr.bf16.gmra.mrb[16].mxu0 %v3546_v62  ;;  %v3682_v62 = vld [vmem:[#allocation8 + $0x28] sm:$0xff]  }
  0xfe   :  { %1942 = vmatprep.mubr.bf16.mxu0 %v3553_v63  ;;  %v3642_v63 = vld [vmem:[#allocation2 + $0x88] ss:$28 sps:$4 sm:$0xff]  }
 0x102   :  { %1627 = vmatmul.mubr.bf16.gmra.mrb[48].mxu1 %v3603_v18 }
 0x103   :  { %1636 = vmatprep.mubr.bf16.mxu1 %v3610_v20  ;;  %v3658_v20 = vld [vmem:[#allocation2 + $0x168] ss:$28 sps:$4 sm:$0xff]  }
 0x105   :  { %1943 = vmatmul.mubr.bf16.gmra.mrb[20].mxu0 %v3555_v1  ;;  %v3650_v1 = vld [vmem:[#allocation2 + $0xf8] ss:$28 sps:$4 sm:$0xff]  }
 0x106   :  { %1952 = vmatprep.mubr.bf16.mxu0 %v3559_v2  ;;  %v3654_v2 = vld [vmem:[#allocation2 + $0x130] ss:$28 sps:$4 sm:$0xff]  }
 0x10a   :  { %1637 = vmatmul.mubr.bf16.gmra.mrb[52].mxu1 %v3612_v21 }
 0x10b   :  { %1646 = vmatprep.mubr.bf16.mxu1 %v3616_v7 }
 0x10d   :  { %1953 = vmatmul.mubr.bf16.gmra.mrb[24].mxu0 %v3561_v17  ;;  %v3684_v17 = vld [vmem:[#allocation8 + $0x30] sm:$0xff]  }
 0x10e   :  { %1962 = vmatprep.mubr.bf16.mxu0 %v3568_v4 }
 0x112   :  { %1647 = vmatmul.mubr.bf16.gmra.mrb[56].mxu1 %v3618_v25 }
 0x113   :  { %1656 = vmatprep.mubr.bf16.mxu1 %v3625_v27 }
 0x115   :  { %1963 = vmatmul.mubr.bf16.gmra.mrb[28].mxu0 %v3570_v5 }
 0x116   :  { %1972 = vmatprep.mubr.bf16.mxu0 %v3574_v6 }
 0x11a   :  { %1657 = vmatmul.mubr.bf16.gmra.mrb[60].mxu1 %v3627_v28 }
 0x11b   :  { %1779 = vmatprep.mubr.bf16.mxu1 %v3633_v11 }
 0x11d   :  { %1973 = vmatmul.mubr.bf16.gmra.mrb[32].mxu0 %v3576_v23  ;;  %v3662_v23 = vld [vmem:[#allocation2 + $0x1a0] ss:$28 sps:$4 sm:$0xff]  }
 0x11e   :  { %1982 = vmatprep.mubr.bf16.mxu0 %v3583_v8 }
 0x122   :  { %1780 = vmatmul.mubr.bf16.vlgmr.msra.gmra.mrb[32].mxu1 %v3631_v32  ;;  %v3664_v32 = vld [vmem:[#allocation2 + $0x210] ss:$28 sps:$4 sm:$0xff]  }
 0x123   :  { %1789 = vmatprep.mubr.bf16.mxu1 %v3635_v35  ;;  %2931 = vmatpush3.bf16.msra.mxu1 %v3672_v34 }
 0x124   :  { %2932 = vmatprep.subr.bf16.mxu1 %v3673_v56  ;;  %v3668_v56 = vld [vmem:[#allocation2 + $0x2f0] ss:$28 sps:$4 sm:$0xff]  }
 0x125   :  { %1983 = vmatmul.mubr.bf16.gmra.mrb[36].mxu0 %v3585_v9 }
 0x126   :  { %1992 = vmatprep.mubr.bf16.mxu0 %v3589_v10  ;;  %v3663_v10 = vld [vmem:[#allocation2 + $0x1d8] ss:$28 sps:$4 sm:$0xff]  }
 0x127   :  { %2933 = vmatpush3.bf16.msra.mxu1 %v3674_v57  ;;  %v3670_v57 = vld [vmem:[#allocation2 + $0x360] ss:$28 sps:$4 sm:$0xff]  }
 0x128   :  { %2934 = vmatprep.subr.bf16.mxu1 %v3675_v41 }
 0x12a   :  { %1790 = vmatmul.mubr.bf16.gmra.mrb[36].mxu1 %v3637_v36 }
 0x12b   :  { %1799 = vmatprep.mubr.bf16.mxu1 %v3639_v19  ;;  %2935 = vmatpush3.bf16.msra.mxu1 %v3676_v42  ;;  %v3665_v19 = vld [vmem:[#allocation2 + $0x248] ss:$28 sps:$4 sm:$0xff]  }
 0x12c   :  { %2936 = vmatprep.subr.bf16.mxu1 %v3677_v58 }
 0x12d   :  { %1993 = vmatmul.mubr.bf16.gmra.mrb[40].mxu0 %v3591_v31 }
 0x12e   :  { %2002 = vmatprep.mubr.bf16.mxu0 %v3598_v12 }
 0x12f   :  { %2937 = vmatpush3.bf16.msra.mxu1 %v3678_v45 }
 0x130   :  { %2938 = vmatprep.subr.bf16.mxu1 %v3679_v46 }
 0x132   :  { %1800 = vmatmul.mubr.bf16.gmra.mrb[40].mxu1 %v3641_v40 }
 0x133   :  { %1809 = vmatprep.mubr.bf16.mxu1 %v3643_v43  ;;  %2939 = vmatpush3.bf16.msra.mxu1 %v3680_v49 }
 0x134   :  { %2940 = vmatprep.subr.bf16.mxu1 %v3681_v0 }
 0x135   :  { %2003 = vmatmul.mubr.bf16.gmra.mrb[44].mxu0 %v3600_v14 }
 0x136   :  { %2012 = vmatprep.mubr.bf16.mxu0 %v3604_v16 }
 0x137   :  { %2941 = vmatpush3.bf16.msra.mxu1 %v3682_v62 }
 0x138   :  { %2942 = vmatprep.subr.bf16.mxu1 %v3683_v53 }
 0x13a   :  { %1810 = vmatmul.mubr.bf16.gmra.mrb[44].mxu1 %v3645_v44  ;;  %v3685_v44 = vld [vmem:[#allocation8 + $0x78] sm:$0xff]  }
 0x13b   :  { %1819 = vmatprep.mubr.bf16.mxu1 %v3647_v29  ;;  %2943 = vmatpush3.bf16.msra.mxu1 %v3684_v17 }
 0x13c   :  { %2944 = vmatprep.subr.bf16.mxu1 %v3685_v44 }
 0x13d   :  { %2013 = vmatmul.mubr.bf16.gmra.mrb[48].mxu0 %v3606_v39 }
 0x13e   :  { %2022 = vmatprep.mubr.bf16.mxu0 %v3613_v22 }
 0x142   :  { %1820 = vmatmul.mubr.bf16.gmra.mrb[48].mxu1 %v3649_v48 }
 0x143   :  { %1829 = vmatprep.mubr.bf16.mxu1 %v3651_v51  ;;  %v3667_v51 = vld [vmem:[#allocation2 + $0x2b8] ss:$28 sps:$4 sm:$0xff]  }
 0x145   :  { %2023 = vmatmul.mubr.bf16.gmra.mrb[52].mxu0 %v3615_v24  ;;  %v3666_v24 = vld [vmem:[#allocation2 + $0x280] ss:$28 sps:$4 sm:$0xff]  }
 0x146   :  { %2032 = vmatprep.mubr.bf16.mxu0 %v3619_v26 }
 0x14a   :  { %1830 = vmatmul.mubr.bf16.gmra.mrb[52].mxu1 %v3653_v55 }
 0x14b   :  { %1839 = vmatprep.mubr.bf16.mxu1 %v3655_v37  ;;  %v3669_v37 = vld [vmem:[#allocation2 + $0x328] ss:$28 sps:$4 sm:$0xff]  }
 0x14d   :  { %2033 = vmatmul.mubr.bf16.gmra.mrb[56].mxu0 %v3621_v47  ;;  %v3686_v47 = vld [vmem:[#allocation8 + $0x38] sm:$0xff]  }
 0x14e   :  { %2042 = vmatprep.mubr.bf16.mxu0 %v3628_v30  ;;  %2945 = vmatpush3.bf16.msra.mxu1 %v3686_v47 }
 0x152   :  { %1840 = vmatmul.mubr.bf16.gmra.mrb[56].mxu1 %v3657_v59 }
 0x153   :  { %1849 = vmatprep.mubr.bf16.mxu1 %v3659_v60 }
 0x155   :  { %2043 = vmatmul.mubr.bf16.gmra.mrb[60].mxu0 %v3630_v52 }
 0x156   :  { %2085 = vmatprep.mubr.bf16.mxu0 %v3838_v54 }
 0x15a   :  { %1850 = vmatmul.mubr.bf16.gmra.mrb[60].mxu1 %v3661_v50 }
 0x15d   :  { %2086 = vmatmul.mubr.bf16.vlgmr.msra.gmra.mrb[0].mxu0 %v3634_v38 }
 0x15e   :  { %2095 = vmatprep.mubr.bf16.mxu0 %v3838_v54 }
 0x165   :  { %2096 = vmatmul.mubr.bf16.gmra.mrb[4].mxu0 %v3638_v61 }
 0x166   :  { %2105 = vmatprep.mubr.bf16.mxu0 %v3838_v54 }
 0x16d   :  { %2106 = vmatmul.mubr.bf16.gmra.mrb[8].mxu0 %v3642_v63  ;;  %v328_v63 = vlaneseq }
 0x16e   :  { %2115 = vmatprep.mubr.bf16.mxu0 %v3838_v54 }
 0x175   :  { %2116 = vmatmul.mubr.bf16.gmra.mrb[12].mxu0 %v3646_v13  ;;  %v4067_v15 = vpop.f32.mrb[0].mxu1 }
 0x176   :  { %2125 = vmatprep.mubr.bf16.mxu0 %v3838_v54  ;;  %v4070_v3 = vpop.f32.mrb[1].mxu1 }
 0x177   :  { %v4072_v4 = vpop.f32.mrb[2].mxu1 }
 0x178   :  { %v4074_v18 = vpop.f32.mrb[3].mxu1 }
 0x17d   :  { %2126 = vmatmul.mubr.bf16.gmra.mrb[16].mxu0 %v3650_v1  ;;  %v4076_v5 = vpop.f32.mrb[4].mxu1  ;;  %v329_v1 = vshrl.u32 %v328_v63, 7 }
 0x17e   :  { %2135 = vmatprep.mubr.bf16.mxu0 %v3838_v54  ;;  %v4079_v6 = vpop.f32.mrb[5].mxu1 }
 0x17f   :  { %v4081_v21 = vpop.f32.mrb[6].mxu1 }
 0x180   :  { %v4083_v7 = vpop.f32.mrb[7].mxu1 }
 0x185   :  { %2136 = vmatmul.mubr.bf16.gmra.mrb[20].mxu0 %v3654_v2  ;;  %v4085_v8 = vpop.f32.mrb[8].mxu1 }
 0x186   :  { %2145 = vmatprep.mubr.bf16.mxu0 %v3838_v54  ;;  %v4088_v25 = vpop.f32.mrb[9].mxu1 }
 0x187   :  { %v4090_v27 = vpop.f32.mrb[10].mxu1 }
 0x188   :  { %v4092_v9 = vpop.f32.mrb[11].mxu1 }
 0x18d   :  { %2146 = vmatmul.mubr.bf16.gmra.mrb[24].mxu0 %v3658_v20  ;;  %v4094_v28 = vpop.f32.mrb[12].mxu1  ;;  %v330_v20 = vsub.s32 0, %v329_v1 }
 0x18e   :  { %2155 = vmatprep.mubr.bf16.mxu0 %v3838_v54  ;;  %v4097_v11 = vpop.f32.mrb[13].mxu1 }
 0x18f   :  { %v4099_v31 = vpop.f32.mrb[14].mxu1 }
 0x190   :  { %v4101_v12 = vpop.f32.mrb[15].mxu1 }
 0x195   :  { %2156 = vmatmul.mubr.bf16.gmra.mrb[28].mxu0 %v3662_v23  ;;  %v4103_v35 = vpop.f32.mrb[16].mxu1 }
 0x196   :  { %2165 = vmatprep.mubr.bf16.mxu0 %v3838_v54  ;;  %v4106_v14 = vpop.f32.mrb[17].mxu1 }
 0x197   :  { %v4108_v16 = vpop.f32.mrb[18].mxu1 }
 0x198   :  { %v4110_v36 = vpop.f32.mrb[19].mxu1 }
 0x19d   :  { %2166 = vmatmul.mubr.bf16.gmra.mrb[32].mxu0 %v3663_v10  ;;  %v4112_v39 = vpop.f32.mrb[20].mxu1  ;;  %v326_v10 = vld [vmem:[#allocation7] sm:$0x3] }
 0x19e   :  { %2175 = vmatprep.mubr.bf16.mxu0 %v3838_v54  ;;  %v4115_v22 = vpop.f32.mrb[21].mxu1 }
 0x19f   :  { %v4117_v40 = vpop.f32.mrb[22].mxu1 }
 0x1a0   :  { %v4119_v43 = vpop.f32.mrb[23].mxu1 }
 0x1a5   :  { %2176 = vmatmul.mubr.bf16.gmra.mrb[36].mxu0 %v3664_v32  ;;  %v4121_v26 = vpop.f32.mrb[24].mxu1  ;;  %v334_v32 = vsub.s32 1, %v329_v1 }
 0x1a6   :  { %2185 = vmatprep.mubr.bf16.mxu0 %v3838_v54  ;;  %v4124_v29 = vpop.f32.mrb[25].mxu1 }
 0x1a7   :  { %v4126_v30 = vpop.f32.mrb[26].mxu1  ;;  %v4183_v44 = vrot.slane %v326_v10, %v334_v32 }
 0x1a8   :  { %v4128_v48 = vpop.f32.mrb[27].mxu1 }
 0x1ad   :  { %2186 = vmatmul.mubr.bf16.gmra.mrb[40].mxu0 %v3665_v19  ;;  %v4130_v52 = vpop.f32.mrb[28].mxu1 }
 0x1ae   :  { %2195 = vmatprep.mubr.bf16.mxu0 %v3838_v54  ;;  %v4133_v33 = vpop.f32.mrb[29].mxu1 }
 0x1af   :  { %v4135_v34 = vpop.f32.mrb[30].mxu1 }
 0x1b0   :  { %v4137_v55 = vpop.f32.mrb[31].mxu1 }
 0x1b5   :  { %2196 = vmatmul.mubr.bf16.gmra.mrb[44].mxu0 %v3666_v24  ;;  %v4181_v24 = vrot.slane %v326_v10, %v330_v20 }
 0x1b6   :  { %2205 = vmatprep.mubr.bf16.mxu0 %v3838_v54 }
 0x1b7   :  { %v1513_v20 = vadd.f32 %v4072_v4, %v4181_v24  ;;  %v1519_v4 = vadd.f32 %v4076_v5, %v4181_v24 }
 0x1bd   :  { %2206 = vmatmul.mubr.bf16.gmra.mrb[48].mxu0 %v3667_v51 }
 0x1be   :  { %2215 = vmatprep.mubr.bf16.mxu0 %v3838_v54 }
 0x1c5   :  { %2216 = vmatmul.mubr.bf16.gmra.mrb[52].mxu0 %v3668_v56  ;;  %v1509_v56 = vadd.f32 %v4067_v15, %v4181_v24 }
 0x1c6   :  { %2225 = vmatprep.mubr.bf16.mxu0 %v3838_v54 }
 0x1cd   :  { %2226 = vmatmul.mubr.bf16.gmra.mrb[56].mxu0 %v3669_v37 }
 0x1ce   :  { %2235 = vmatprep.mubr.bf16.mxu0 %v3838_v54 }
 0x1d5   :  { %2236 = vmatmul.mubr.bf16.gmra.mrb[60].mxu0 %v3670_v57  ;;  %v1511_v57 = vadd.f32 %v4070_v3, %v4183_v44 }
 0x1f5   :  { %v4141_v38 = vpop.f32.mrb[32].mxu1 }
 0x1f6   :  { %v4143_v41 = vpop.f32.mrb[33].mxu1 }
 0x1f7   :  { %v4145_v42 = vpop.f32.mrb[34].mxu1 }
 0x1f8   :  { %v4147_v58 = vpop.f32.mrb[35].mxu1 }
 0x1fd   :  { %v4149_v59 = vpop.f32.mrb[36].mxu1 }
 0x1fe   :  { %v4151_v60 = vpop.f32.mrb[37].mxu1 }
 0x1ff   :  { %v4153_v45 = vpop.f32.mrb[38].mxu1 }
 0x200   :  { %v4155_v61 = vpop.f32.mrb[39].mxu1 }
 0x205   :  { %v4157_v46 = vpop.f32.mrb[40].mxu1 }
 0x206   :  { %v4159_v54 = vpop.f32.mrb[41].mxu1 }
 0x207   :  { %v4161_v49 = vpop.f32.mrb[42].mxu1 }
 0x208   :  { %v4163_v0 = vpop.f32.mrb[43].mxu1 }
 0x20d   :  { %v4165_v50 = vpop.f32.mrb[44].mxu1 }
 0x20e   :  { %v4167_v62 = vpop.f32.mrb[45].mxu1 }
 0x20f   :  { %v4169_v53 = vpop.f32.mrb[46].mxu1 }
 0x210   :  { %4392 = vst [vmem:[#allocation16_spill] sm:$0xff] %v4169_v53  ;;  %v4171_v13 = vpop.f32.mrb[47].mxu1 }
 0x211   :  { %4393 = vst [vmem:[#allocation17_spill] sm:$0xff] %v4171_v13 }
 0x215   :  { %v4173_v2 = vpop.f32.mrb[48].mxu1 }
 0x216   :  { %4394 = vst [vmem:[#allocation18_spill] sm:$0xff] %v4173_v2  ;;  %v4175_v17 = vpop.f32.mrb[49].mxu1 }
 0x217   :  { %4395 = vst [vmem:[#allocation19_spill] sm:$0xff] %v4175_v17  ;;  %v4177_v23 = vpop.f32.mrb[50].mxu1 }
 0x218   :  { %4396 = vst [vmem:[#allocation20_spill] sm:$0xff] %v4177_v23  ;;  %v4179_v19 = vpop.f32.mrb[51].mxu1 }
 0x219   :  { %4397 = vst [vmem:[#allocation21_spill] sm:$0xff] %v4179_v19 }
 0x21d   :  { %v4185_v47 = vpop.f32.mrb[52].mxu1 }
 0x21e   :  { %4398 = vst [vmem:[#allocation22_spill] sm:$0xff] %v4185_v47  ;;  %v4187_v51 = vpop.f32.mrb[53].mxu1  ;;  %v1515_v47 = vadd.f32 %v4074_v18, %v4183_v44  ;;  %v1521_v18 = vadd.f32 %v4079_v6, %v4183_v44 }
 0x21f   :  { %4399 = vst [vmem:[#allocation23_spill] sm:$0xff] %v4187_v51  ;;  %v4191_v37 = vpop.f32.mrb[54].mxu1 }
 0x220   :  { %4400 = vst [vmem:[#allocation24_spill] sm:$0xff] %v4191_v37  ;;  %v4195_v1 = vpop.f32.mrb[55].mxu1 }
 0x221   :  { %4401 = vst [vmem:[#allocation25_spill] sm:$0xff] %v4195_v1 }
 0x225   :  { %v4201_v13 = vpop.f32.mrb[56].mxu1 }
 0x226   :  { %v4203_v1 = vpop.f32.mrb[57].mxu1 }
 0x230   :  { %v2087_v63 = vpop.f32.mrb[0].mxu0 }
 0x231   :  { %v3075_v10 = vadd.f32 %v2087_v63, %v1509_v56  ;;  %v2089_v32 = vpop.f32.mrb[1].mxu0  ;;  %v4207_v63 = vpop.f32.mrb[58].mxu1 }
 0x232   :  { %v3077_v51 = vadd.f32 %v2089_v32, %v1511_v57  ;;  %v2091_v19 = vpop.f32.mrb[2].mxu0  ;;  %4402 = vst [vmem:[#allocation26_spill] sm:$0xff] %v4207_v63 }
 0x233   :  { %v3079_v23 = vadd.f32 %v2091_v19, %v1513_v20  ;;  %v2093_v15 = vpop.f32.mrb[3].mxu0  ;;  %v2246_v37 = vmax.f32 %v3075_v10, 0.0  ;;  %v1525_v20 = vadd.f32 %v4083_v7, %v4183_v44 }
 0x234   :  { %v3081_v17 = vadd.f32 %v2093_v15, %v1515_v47  ;;  %v2247_v3 = vmax.f32 %v3077_v51, 0.0  ;;  %v4211_v47 = vpop.f32.mrb[59].mxu1 }
 0x235   :  { %v2248_v2 = vmax.f32 %v3079_v23, 0.0  ;;  %4403 = vst [vmem:[#allocation27_spill] sm:$0xff] %v4211_v47  ;;  %v1523_v23 = vadd.f32 %v4081_v21, %v4181_v24  ;;  %v4217_v15 = vpop.f32.mrb[60].mxu1  ;;  %v1529_v21 = vadd.f32 %v4085_v8, %v4181_v24 }
 0x236   :  { %v2249_v53 = vmax.f32 %v3081_v17, 0.0  ;;  %v4219_v63 = vpop.f32.mrb[61].mxu1 }
 0x237   :  { %v2310_v56 = vpack.c.bf16 %v2248_v2, %v2246_v37  ;;  %v4223_v7 = vpop.f32.mrb[62].mxu1 }
 0x238   :  { %v2311_v19 = vpack.c.bf16 %v2249_v53, %v2247_v3  ;;  %v2097_v57 = vpop.f32.mrb[4].mxu0 }
 0x239   :  { %v3083_v51 = vadd.f32 %v2097_v57, %v1519_v4  ;;  %v2099_v17 = vpop.f32.mrb[5].mxu0  ;;  %v4227_v57 = vpop.f32.mrb[63].mxu1 }
 0x23a   :  { %v3085_v10 = vadd.f32 %v2099_v17, %v1521_v18  ;;  %v2101_v5 = vpop.f32.mrb[6].mxu0  ;;  %2509 = vmatprep.mubr.bf16.mxu1 %v2311_v19  ;;  %v1531_v18 = vadd.f32 %v4088_v25, %v4183_v44 }
 0x23b   :  { %v3087_v2 = vadd.f32 %v2101_v5, %v1523_v23  ;;  %v2103_v37 = vpop.f32.mrb[7].mxu0  ;;  %2510 = vmatmul.mubr.bf16.vlgmr.msra.gmra.mrb[64].mxu1 %v2310_v56  ;;  %v2250_v6 = vmax.f32 %v3083_v51, 0.0  ;;  %v1533_v23 = vadd.f32 %v4090_v27, %v4181_v24 }
 0x23c   :  { %v3089_v32 = vadd.f32 %v2103_v37, %v1525_v20  ;;  %v2251_v3 = vmax.f32 %v3085_v10, 0.0  ;;  %v1535_v20 = vadd.f32 %v4092_v9, %v4183_v44 }
 0x23d   :  { %v2252_v53 = vmax.f32 %v3087_v2, 0.0 }
 0x23e   :  { %v2253_v47 = vmax.f32 %v3089_v32, 0.0 }
 0x23f   :  { %v2312_v4 = vpack.c.bf16 %v2252_v53, %v2250_v6  ;;  %v1539_v53 = vadd.f32 %v4094_v28, %v4181_v24 }
 0x240   :  { %v2313_v19 = vpack.c.bf16 %v2253_v47, %v2251_v3  ;;  %v2107_v56 = vpop.f32.mrb[8].mxu0  ;;  %v1541_v3 = vadd.f32 %v4097_v11, %v4183_v44 }
 0x241   :  { %v3091_v51 = vadd.f32 %v2107_v56, %v1529_v21  ;;  %v2109_v17 = vpop.f32.mrb[9].mxu0 }
 0x242   :  { %v3093_v10 = vadd.f32 %v2109_v17, %v1531_v18  ;;  %v2111_v8 = vpop.f32.mrb[10].mxu0  ;;  %2517 = vmatprep.mubr.bf16.mxu1 %v2313_v19  ;;  %v1543_v18 = vadd.f32 %v4099_v31, %v4181_v24 }
 0x243   :  { %v3095_v5 = vadd.f32 %v2111_v8, %v1533_v23  ;;  %v2113_v2 = vpop.f32.mrb[11].mxu0  ;;  %2518 = vmatmul.mubr.bf16.gmra.mrb[68].mxu1 %v2312_v4  ;;  %v2254_v25 = vmax.f32 %v3091_v51, 0.0  ;;  %v1545_v4 = vadd.f32 %v4101_v12, %v4183_v44 }
 0x244   :  { %v3097_v37 = vadd.f32 %v2113_v2, %v1535_v20  ;;  %v2255_v32 = vmax.f32 %v3093_v10, 0.0  ;;  %v1549_v2 = vadd.f32 %v4103_v35, %v4181_v24 }
 0x245   :  { %v2256_v47 = vmax.f32 %v3095_v5, 0.0 }
 0x246   :  { %v2257_v6 = vmax.f32 %v3097_v37, 0.0  ;;  %v1551_v37 = vadd.f32 %v4106_v14, %v4183_v44 }
 0x247   :  { %v2314_v27 = vpack.c.bf16 %v2256_v47, %v2254_v25  ;;  %v1553_v47 = vadd.f32 %v4108_v16, %v4181_v24 }
 0x248   :  { %v2315_v21 = vpack.c.bf16 %v2257_v6, %v2255_v32  ;;  %v2117_v9 = vpop.f32.mrb[12].mxu0 }
 0x249   :  { %v3099_v19 = vadd.f32 %v2117_v9, %v1539_v53  ;;  %v2119_v56 = vpop.f32.mrb[13].mxu0  ;;  %v1555_v53 = vadd.f32 %v4110_v36, %v4183_v44 }
 0x24a   :  { %v3101_v23 = vadd.f32 %v2119_v56, %v1541_v3  ;;  %v2121_v51 = vpop.f32.mrb[14].mxu0  ;;  %2525 = vmatprep.mubr.bf16.mxu1 %v2315_v21 }
 0x24b   :  { %v3103_v17 = vadd.f32 %v2121_v51, %v1543_v18  ;;  %v2123_v20 = vpop.f32.mrb[15].mxu0  ;;  %2526 = vmatmul.mubr.bf16.gmra.mrb[72].mxu1 %v2314_v27  ;;  %v2258_v10 = vmax.f32 %v3099_v19, 0.0 }
 0x24c   :  { %v3105_v28 = vadd.f32 %v2123_v20, %v1545_v4  ;;  %v2259_v11 = vmax.f32 %v3101_v23, 0.0  ;;  %v1559_v4 = vadd.f32 %v4112_v39, %v4181_v24  ;;  %v1561_v23 = vadd.f32 %v4115_v22, %v4183_v44 }
 0x24d   :  { %v2260_v8 = vmax.f32 %v3103_v17, 0.0  ;;  %v1563_v17 = vadd.f32 %v4117_v40, %v4181_v24 }
 0x24e   :  { %v2261_v5 = vmax.f32 %v3105_v28, 0.0 }
 0x24f   :  { %v2316_v31 = vpack.c.bf16 %v2260_v8, %v2258_v10  ;;  %v1565_v10 = vadd.f32 %v4119_v43, %v4183_v44 }
 0x250   :  { %v2317_v25 = vpack.c.bf16 %v2261_v5, %v2259_v11  ;;  %v2127_v12 = vpop.f32.mrb[16].mxu0 }
 0x251   :  { %v3107_v32 = vadd.f32 %v2127_v12, %v1549_v2  ;;  %v2129_v6 = vpop.f32.mrb[17].mxu0  ;;  %v1569_v12 = vadd.f32 %v4121_v26, %v4181_v24 }
 0x252   :  { %v3109_v27 = vadd.f32 %v2129_v6, %v1551_v37  ;;  %v2131_v3 = vpop.f32.mrb[18].mxu0  ;;  %2533 = vmatprep.mubr.bf16.mxu1 %v2317_v25  ;;  %v1573_v6 = vadd.f32 %v4126_v30, %v4181_v24 }
 0x253   :  { %v3111_v21 = vadd.f32 %v2131_v3, %v1553_v47  ;;  %v2133_v9 = vpop.f32.mrb[19].mxu0  ;;  %2534 = vmatmul.mubr.bf16.gmra.mrb[76].mxu1 %v2316_v31  ;;  %v2262_v18 = vmax.f32 %v3107_v32, 0.0  ;;  %v1571_v47 = vadd.f32 %v4124_v29, %v4183_v44  ;;  %v1575_v3 = vadd.f32 %v4128_v48, %v4183_v44 }
 0x254   :  { %v3113_v35 = vadd.f32 %v2133_v9, %v1555_v53  ;;  %v2263_v14 = vmax.f32 %v3109_v27, 0.0 }
 0x255   :  { %v2264_v19 = vmax.f32 %v3111_v21, 0.0 }
 0x256   :  { %v2265_v56 = vmax.f32 %v3113_v35, 0.0 }
 0x257   :  { %v2318_v16 = vpack.c.bf16 %v2264_v19, %v2262_v18 }
 0x258   :  { %v2319_v51 = vpack.c.bf16 %v2265_v56, %v2263_v14  ;;  %v2137_v36 = vpop.f32.mrb[20].mxu0 }
 0x259   :  { %v3115_v20 = vadd.f32 %v2137_v36, %v1559_v4  ;;  %v2139_v28 = vpop.f32.mrb[21].mxu0  ;;  %v1579_v4 = vadd.f32 %v4130_v52, %v4181_v24 }
 0x25a   :  { %v3117_v8 = vadd.f32 %v2139_v28, %v1561_v23  ;;  %v2141_v11 = vpop.f32.mrb[22].mxu0  ;;  %2541 = vmatprep.mubr.bf16.mxu1 %v2319_v51  ;;  %v1583_v51 = vadd.f32 %v4135_v34, %v4181_v24 }
 0x25b   :  { %v3119_v5 = vadd.f32 %v2141_v11, %v1563_v17  ;;  %v2143_v2 = vpop.f32.mrb[23].mxu0  ;;  %2542 = vmatmul.mubr.bf16.gmra.mrb[80].mxu1 %v2318_v16  ;;  %v2266_v31 = vmax.f32 %v3115_v20, 0.0  ;;  %v1581_v16 = vadd.f32 %v4133_v33, %v4183_v44  ;;  %v1585_v20 = vadd.f32 %v4137_v55, %v4183_v44 }
 0x25c   :  { %v3121_v39 = vadd.f32 %v2143_v2, %v1565_v10  ;;  %v2267_v22 = vmax.f32 %v3117_v8, 0.0 }
 0x25d   :  { %v2268_v37 = vmax.f32 %v3119_v5, 0.0 }
 0x25e   :  { %v2269_v25 = vmax.f32 %v3121_v39, 0.0 }
 0x25f   :  { %v2320_v40 = vpack.c.bf16 %v2268_v37, %v2266_v31  ;;  %v3138_v31 = vadd.f32 %v4141_v38, %v4181_v24  ;;  %v3140_v37 = vadd.f32 %v4143_v41, %v4183_v44 }
 0x260   :  { %v2321_v32 = vpack.c.bf16 %v2269_v25, %v2267_v22  ;;  %v2147_v43 = vpop.f32.mrb[24].mxu0  ;;  %v3142_v25 = vadd.f32 %v4145_v42, %v4181_v24 }
 0x261   :  { %v3123_v53 = vadd.f32 %v2147_v43, %v1569_v12  ;;  %v2149_v27 = vpop.f32.mrb[25].mxu0 }
 0x262   :  { %v3125_v21 = vadd.f32 %v2149_v27, %v1571_v47  ;;  %v2151_v9 = vpop.f32.mrb[26].mxu0  ;;  %2549 = vmatprep.mubr.bf16.mxu1 %v2321_v32  ;;  %v3144_v47 = vadd.f32 %v4147_v58, %v4183_v44 }
 0x263   :  { %v3127_v35 = vadd.f32 %v2151_v9, %v1573_v6  ;;  %v2153_v18 = vpop.f32.mrb[27].mxu0  ;;  %2550 = vmatmul.mubr.bf16.gmra.mrb[84].mxu1 %v2320_v40  ;;  %v2270_v19 = vmax.f32 %v3123_v53, 0.0  ;;  %v3146_v9 = vadd.f32 %v4149_v59, %v4181_v24 }
 0x264   :  { %v3129_v26 = vadd.f32 %v2153_v18, %v1575_v3  ;;  %v2271_v29 = vmax.f32 %v3125_v21, 0.0 }
 0x265   :  { %v2272_v14 = vmax.f32 %v3127_v35, 0.0  ;;  %v3148_v35 = vadd.f32 %v4151_v60, %v4183_v44 }
 0x266   :  { %v2273_v56 = vmax.f32 %v3129_v26, 0.0  ;;  %v3150_v26 = vadd.f32 %v4153_v45, %v4181_v24 }
 0x267   :  { %v2322_v30 = vpack.c.bf16 %v2272_v14, %v2270_v19 }
 0x268   :  { %v2323_v23 = vpack.c.bf16 %v2273_v56, %v2271_v29  ;;  %v2157_v48 = vpop.f32.mrb[28].mxu0  ;;  %v3152_v29 = vadd.f32 %v4155_v61, %v4183_v44 }
 0x269   :  { %v3131_v36 = vadd.f32 %v2157_v48, %v1579_v4  ;;  %v2159_v17 = vpop.f32.mrb[29].mxu0 }
 0x26a   :  { %v3133_v28 = vadd.f32 %v2159_v17, %v1581_v16  ;;  %v2161_v10 = vpop.f32.mrb[30].mxu0  ;;  %2557 = vmatprep.mubr.bf16.mxu1 %v2323_v23  ;;  %v3156_v17 = vadd.f32 %v4159_v54, %v4183_v44 }
 0x26b   :  { %v3135_v8 = vadd.f32 %v2161_v10, %v1583_v51  ;;  %v2163_v11 = vpop.f32.mrb[31].mxu0  ;;  %2558 = vmatmul.mubr.bf16.gmra.mrb[88].mxu1 %v2322_v30  ;;  %v2274_v5 = vmax.f32 %v3131_v36, 0.0  ;;  %v3154_v36 = vadd.f32 %v4157_v46, %v4181_v24 }
 0x26c   :  { %v3137_v52 = vadd.f32 %v2163_v11, %v1585_v20  ;;  %v2275_v33 = vmax.f32 %v3133_v28, 0.0  ;;  %v3158_v28 = vadd.f32 %v4161_v49, %v4181_v24  ;;  %v3160_v11 = vadd.f32 %v4163_v0, %v4183_v44 }
 0x26d   :  { %v2276_v2 = vmax.f32 %v3135_v8, 0.0 }
 0x26e   :  { %v2277_v39 = vmax.f32 %v3137_v52, 0.0 }
 0x26f   :  { %v2324_v34 = vpack.c.bf16 %v2276_v2, %v2274_v5 }
 0x270   :  { %v2325_v22 = vpack.c.bf16 %v2277_v39, %v2275_v33  ;;  %v2167_v55 = vpop.f32.mrb[32].mxu0 }
 0x271   :  { %v3139_v12 = vadd.f32 %v3138_v31, %v2167_v55  ;;  %v2169_v40 = vpop.f32.mrb[33].mxu0 }
 0x272   :  { %v3141_v32 = vadd.f32 %v3140_v37, %v2169_v40  ;;  %v2171_v43 = vpop.f32.mrb[34].mxu0  ;;  %2565 = vmatprep.mubr.bf16.mxu1 %v2325_v22  ;;  %v3162_v37 = vadd.f32 %v4165_v50, %v4181_v24  ;;  %v3164_v22 = vadd.f32 %v4167_v62, %v4183_v44 }
 0x273   :  { %v3143_v6 = vadd.f32 %v3142_v25, %v2171_v43  ;;  %v2173_v53 = vpop.f32.mrb[35].mxu0  ;;  %2566 = vmatmul.mubr.bf16.gmra.mrb[92].mxu1 %v2324_v34  ;;  %v2278_v27 = vmax.f32 %v3139_v12, 0.0  ;;  %v4404_v25 = vld [vmem:[#allocation16_spill] sm:$0xff] }
 0x274   :  { %v3145_v38 = vadd.f32 %v3144_v47, %v2173_v53  ;;  %v2279_v41 = vmax.f32 %v3141_v32, 0.0  ;;  %v3166_v12 = vadd.f32 %v4404_v25, %v4181_v24  ;;  %v4405_v32 = vld [vmem:[#allocation17_spill] sm:$0xff] }
 0x275   :  { %v2280_v3 = vmax.f32 %v3143_v6, 0.0  ;;  %v3168_v43 = vadd.f32 %v4405_v32, %v4183_v44 }
 0x276   :  { %v2281_v21 = vmax.f32 %v3145_v38, 0.0 }
 0x277   :  { %v2326_v42 = vpack.c.bf16 %v2280_v3, %v2278_v27 }
 0x278   :  { %v2327_v18 = vpack.c.bf16 %v2281_v21, %v2279_v41  ;;  %v2177_v58 = vpop.f32.mrb[36].mxu0 }
 0x279   :  { %v3147_v19 = vadd.f32 %v3146_v9, %v2177_v58  ;;  %v2179_v14 = vpop.f32.mrb[37].mxu0  ;;  %v4406_v9 = vld [vmem:[#allocation18_spill] sm:$0xff] }
 0x27a   :  { %v3149_v56 = vadd.f32 %v3148_v35, %v2179_v14  ;;  %v2181_v4 = vpop.f32.mrb[38].mxu0  ;;  %2573 = vmatprep.mubr.bf16.mxu1 %v2327_v18  ;;  %v4407_v18 = vld [vmem:[#allocation19_spill] sm:$0xff]  ;;  %v4408_v14 = vld [vmem:[#allocation20_spill] sm:$0xff] }
 0x27b   :  { %v3151_v30 = vadd.f32 %v3150_v26, %v2181_v4  ;;  %v2183_v16 = vpop.f32.mrb[39].mxu0  ;;  %2574 = vmatmul.mubr.bf16.gmra.mrb[96].mxu1 %v2326_v42  ;;  %v2282_v23 = vmax.f32 %v3147_v19, 0.0  ;;  %v3170_v42 = vadd.f32 %v4406_v9, %v4181_v24  ;;  %v3172_v58 = vadd.f32 %v4407_v18, %v4183_v44 }
 0x27c   :  { %v3153_v59 = vadd.f32 %v3152_v29, %v2183_v16  ;;  %v2283_v60 = vmax.f32 %v3149_v56, 0.0  ;;  %v3174_v29 = vadd.f32 %v4408_v14, %v4181_v24 }
 0x27d   :  { %v2284_v48 = vmax.f32 %v3151_v30, 0.0  ;;  %v4409_v30 = vld [vmem:[#allocation21_spill] sm:$0xff] }
 0x27e   :  { %v2285_v51 = vmax.f32 %v3153_v59, 0.0  ;;  %v3176_v16 = vadd.f32 %v4409_v30, %v4183_v44  ;;  %v3198_v30 = vadd.f32 %v4223_v7, %v4181_v24  ;;  %v4337_v7 = vld [vmem:[#allocation10] ss:$0 sm:$0xff] }
 0x27f   :  { %v2328_v45 = vpack.c.bf16 %v2284_v48, %v2282_v23 }
 0x280   :  { %v2329_v20 = vpack.c.bf16 %v2285_v51, %v2283_v60  ;;  %v2187_v61 = vpop.f32.mrb[40].mxu0 }
 0x281   :  { %v3155_v10 = vadd.f32 %v3154_v36, %v2187_v61  ;;  %v2189_v8 = vpop.f32.mrb[41].mxu0  ;;  %v4410_v61 = vld [vmem:[#allocation22_spill] sm:$0xff] }
 0x282   :  { %v3157_v52 = vadd.f32 %v3156_v17, %v2189_v8  ;;  %v2191_v5 = vpop.f32.mrb[42].mxu0  ;;  %2581 = vmatprep.mubr.bf16.mxu1 %v2329_v20  ;;  %v4411_v8 = vld [vmem:[#allocation23_spill] sm:$0xff] }
 0x283   :  { %v3159_v2 = vadd.f32 %v3158_v28, %v2191_v5  ;;  %v2193_v33 = vpop.f32.mrb[43].mxu0  ;;  %2582 = vmatmul.mubr.bf16.gmra.mrb[100].mxu1 %v2328_v45  ;;  %v2286_v39 = vmax.f32 %v3155_v10, 0.0  ;;  %v3178_v28 = vadd.f32 %v4410_v61, %v4181_v24 }
 0x284   :  { %v3161_v46 = vadd.f32 %v3160_v11, %v2193_v33  ;;  %v2287_v54 = vmax.f32 %v3157_v52, 0.0  ;;  %v3180_v11 = vadd.f32 %v4411_v8, %v4183_v44 }
 0x285   :  { %v2288_v31 = vmax.f32 %v3159_v2, 0.0  ;;  %v4412_v2 = vld [vmem:[#allocation24_spill] sm:$0xff] }
 0x286   :  { %v2289_v34 = vmax.f32 %v3161_v46, 0.0  ;;  %v3182_v33 = vadd.f32 %v4412_v2, %v4181_v24 }
 0x287   :  { %v2330_v49 = vpack.c.bf16 %v2288_v31, %v2286_v39  ;;  %v4413_v31 = vld [vmem:[#allocation25_spill] sm:$0xff] }
 0x288   :  { %v2331_v55 = vpack.c.bf16 %v2289_v34, %v2287_v54  ;;  %v2197_v0 = vpop.f32.mrb[44].mxu0  ;;  %v3184_v54 = vadd.f32 %v4413_v31, %v4183_v44 }
 0x289   :  { %v3163_v40 = vadd.f32 %v3162_v37, %v2197_v0  ;;  %v2199_v47 = vpop.f32.mrb[45].mxu0 }
 0x28a   :  { %v3165_v6 = vadd.f32 %v3164_v22, %v2199_v47  ;;  %v2201_v53 = vpop.f32.mrb[46].mxu0  ;;  %2589 = vmatprep.mubr.bf16.mxu1 %v2331_v55  ;;  %v3186_v47 = vadd.f32 %v4201_v13, %v4181_v24 }
 0x28b   :  { %v3167_v38 = vadd.f32 %v3166_v12, %v2201_v53  ;;  %v2203_v27 = vpop.f32.mrb[47].mxu0  ;;  %2590 = vmatmul.mubr.bf16.gmra.mrb[104].mxu1 %v2330_v49  ;;  %v2290_v3 = vmax.f32 %v3163_v40, 0.0 }
 0x28c   :  { %v3169_v50 = vadd.f32 %v3168_v43, %v2203_v27  ;;  %v2291_v62 = vmax.f32 %v3165_v6, 0.0  ;;  %v3188_v43 = vadd.f32 %v4203_v1, %v4183_v44 }
 0x28d   :  { %v2292_v41 = vmax.f32 %v3167_v38, 0.0  ;;  %v4414_v38 = vld [vmem:[#allocation26_spill] sm:$0xff] }
 0x28e   :  { %v2293_v21 = vmax.f32 %v3169_v50, 0.0  ;;  %v3190_v27 = vadd.f32 %v4414_v38, %v4181_v24 }
 0x28f   :  { %v2332_v35 = vpack.c.bf16 %v2292_v41, %v2290_v3  ;;  %v4415_v41 = vld [vmem:[#allocation27_spill] sm:$0xff] }
 0x290   :  { %v2333_v26 = vpack.c.bf16 %v2293_v21, %v2291_v62  ;;  %v2207_v19 = vpop.f32.mrb[48].mxu0  ;;  %v3192_v62 = vadd.f32 %v4415_v41, %v4183_v44 }
 0x291   :  { %v3171_v56 = vadd.f32 %v3170_v42, %v2207_v19  ;;  %v2209_v4 = vpop.f32.mrb[49].mxu0  ;;  %v3194_v19 = vadd.f32 %v4217_v15, %v4181_v24 }
 0x292   :  { %v3173_v59 = vadd.f32 %v3172_v58, %v2209_v4  ;;  %v2211_v23 = vpop.f32.mrb[50].mxu0  ;;  %2597 = vmatprep.mubr.bf16.mxu1 %v2333_v26 }
 0x293   :  { %v3175_v48 = vadd.f32 %v3174_v29, %v2211_v23  ;;  %v2213_v60 = vpop.f32.mrb[51].mxu0  ;;  %2598 = vmatmul.mubr.bf16.gmra.mrb[108].mxu1 %v2332_v35  ;;  %v2294_v36 = vmax.f32 %v3171_v56, 0.0  ;;  %v3196_v29 = vadd.f32 %v4219_v63, %v4183_v44  ;;  %v3200_v23 = vadd.f32 %v4227_v57, %v4183_v44 }
 0x294   :  { %v3177_v51 = vadd.f32 %v3176_v16, %v2213_v60  ;;  %v2295_v17 = vmax.f32 %v3173_v59, 0.0 }
 0x295   :  { %v2296_v45 = vmax.f32 %v3175_v48, 0.0 }
 0x296   :  { %v2297_v20 = vmax.f32 %v3177_v51, 0.0 }
 0x297   :  { %v2334_v10 = vpack.c.bf16 %v2296_v45, %v2294_v36 }
 0x298   :  { %v2335_v52 = vpack.c.bf16 %v2297_v20, %v2295_v17  ;;  %v2217_v5 = vpop.f32.mrb[52].mxu0 }
 0x299   :  { %v3179_v46 = vadd.f32 %v3178_v28, %v2217_v5  ;;  %v2219_v39 = vpop.f32.mrb[53].mxu0 }
 0x29a   :  { %v3181_v34 = vadd.f32 %v3180_v11, %v2219_v39  ;;  %v2221_v37 = vpop.f32.mrb[54].mxu0  ;;  %2605 = vmatprep.mubr.bf16.mxu1 %v2335_v52 }
 0x29b   :  { %v3183_v49 = vadd.f32 %v3182_v33, %v2221_v37  ;;  %v2223_v22 = vpop.f32.mrb[55].mxu0  ;;  %2606 = vmatmul.mubr.bf16.gmra.mrb[112].mxu1 %v2334_v10  ;;  %v2298_v0 = vmax.f32 %v3179_v46, 0.0 }
 0x29c   :  { %v3185_v55 = vadd.f32 %v3184_v54, %v2223_v22  ;;  %v2299_v12 = vmax.f32 %v3181_v34, 0.0 }
 0x29d   :  { %v2300_v25 = vmax.f32 %v3183_v49, 0.0 }
 0x29e   :  { %v2301_v40 = vmax.f32 %v3185_v55, 0.0 }
 0x29f   :  { %v2336_v32 = vpack.c.bf16 %v2300_v25, %v2298_v0 }
 0x2a0   :  { %v2337_v6 = vpack.c.bf16 %v2301_v40, %v2299_v12  ;;  %v2227_v53 = vpop.f32.mrb[56].mxu0 }
 0x2a1   :  { %v3187_v50 = vadd.f32 %v3186_v47, %v2227_v53  ;;  %v2229_v3 = vpop.f32.mrb[57].mxu0 }
 0x2a2   :  { %v3189_v21 = vadd.f32 %v3188_v43, %v2229_v3  ;;  %v2231_v9 = vpop.f32.mrb[58].mxu0  ;;  %2613 = vmatprep.mubr.bf16.mxu1 %v2337_v6 }
 0x2a3   :  { %v3191_v42 = vadd.f32 %v3190_v27, %v2231_v9  ;;  %v2233_v35 = vpop.f32.mrb[59].mxu0  ;;  %2614 = vmatmul.mubr.bf16.gmra.mrb[116].mxu1 %v2336_v32  ;;  %v2302_v18 = vmax.f32 %v3187_v50, 0.0 }
 0x2a4   :  { %v3193_v13 = vadd.f32 %v3192_v62, %v2233_v35  ;;  %v2303_v1 = vmax.f32 %v3189_v21, 0.0 }
 0x2a5   :  { %v2304_v58 = vmax.f32 %v3191_v42, 0.0 }
 0x2a6   :  { %v2305_v26 = vmax.f32 %v3193_v13, 0.0 }
 0x2a7   :  { %v2338_v14 = vpack.c.bf16 %v2304_v58, %v2302_v18 }
 0x2a8   :  { %v2339_v56 = vpack.c.bf16 %v2305_v26, %v2303_v1  ;;  %v2237_v4 = vpop.f32.mrb[60].mxu0 }
 0x2a9   :  { %v3195_v16 = vadd.f32 %v3194_v19, %v2237_v4  ;;  %v2239_v59 = vpop.f32.mrb[61].mxu0 }
 0x2aa   :  { %v3197_v48 = vadd.f32 %v3196_v29, %v2239_v59  ;;  %v2241_v60 = vpop.f32.mrb[62].mxu0  ;;  %2621 = vmatprep.mubr.bf16.mxu1 %v2339_v56 }
 0x2ab   :  { %v3199_v51 = vadd.f32 %v3198_v30, %v2241_v60  ;;  %v2243_v36 = vpop.f32.mrb[63].mxu0  ;;  %2622 = vmatmul.mubr.bf16.gmra.mrb[120].mxu1 %v2338_v14  ;;  %v2306_v45 = vmax.f32 %v3195_v16, 0.0 }
 0x2ac   :  { %v3201_v15 = vadd.f32 %v3200_v23, %v2243_v36  ;;  %v2307_v63 = vmax.f32 %v3197_v48, 0.0 }
 0x2ad   :  { %v2308_v17 = vmax.f32 %v3199_v51, 0.0 }
 0x2ae   :  { %v2309_v20 = vmax.f32 %v3201_v15, 0.0 }
 0x2af   :  { %v2340_v61 = vpack.c.bf16 %v2308_v17, %v2306_v45 }
 0x2b0   :  { %v2341_v28 = vpack.c.bf16 %v2309_v20, %v2307_v63 }
 0x2b2   :  { %2629 = vmatprep.mubr.bf16.mxu1 %v2341_v28 }
 0x2b3   :  { %2630 = vmatmul.mubr.bf16.gmra.mrb[124].mxu1 %v2340_v61 }
 0x30e   :  { %v2946_v24 = vpop.f32.mrb[64].mxu1 }
 0x30f   :  { %v2947_v10 = vpop.f32.mrb[65].mxu1 }
 0x310   :  { %v2948_v44 = vadd.f32 %v2947_v10, %v2946_v24  ;;  %v2949_v57 = vpop.f32.mrb[66].mxu1 }
 0x311   :  { %v2950_v8 = vpop.f32.mrb[67].mxu1 }
 0x312   :  { %v2512_v11 = vadd.f32 %v2948_v44, %v4337_v7  ;;  %v2951_v52 = vadd.f32 %v2950_v8, %v2949_v57 }
 0x314   :  { %2638 = vst [vmem:[#allocation11] sm:$0xff] %v2512_v11  ;;  %v2515_v5 = vadd.f32 %v2951_v52, %v4337_v7 }
 0x316   :  { %2639 = vst [vmem:[#allocation11 + $0x8] sm:$0xff] %v2515_v5  ;;  %v2952_v2 = vpop.f32.mrb[68].mxu1 }
 0x317   :  { %v2953_v33 = vpop.f32.mrb[69].mxu1 }
 0x318   :  { %v2954_v46 = vadd.f32 %v2953_v33, %v2952_v2  ;;  %v2955_v39 = vpop.f32.mrb[70].mxu1 }
 0x319   :  { %v2956_v31 = vpop.f32.mrb[71].mxu1 }
 0x31a   :  { %v2520_v54 = vadd.f32 %v2954_v46, %v4337_v7  ;;  %v2957_v34 = vadd.f32 %v2956_v31, %v2955_v39 }
 0x31c   :  { %2640 = vst [vmem:[#allocation11 + $0x10] sm:$0xff] %v2520_v54  ;;  %v2523_v37 = vadd.f32 %v2957_v34, %v4337_v7 }
 0x31e   :  { %2641 = vst [vmem:[#allocation11 + $0x18] sm:$0xff] %v2523_v37  ;;  %v2958_v49 = vpop.f32.mrb[72].mxu1 }
 0x31f   :  { %v2959_v22 = vpop.f32.mrb[73].mxu1 }
 0x320   :  { %v2960_v55 = vadd.f32 %v2959_v22, %v2958_v49  ;;  %v2961_v0 = vpop.f32.mrb[74].mxu1 }
 0x321   :  { %v2962_v25 = vpop.f32.mrb[75].mxu1 }
 0x322   :  { %v2528_v12 = vadd.f32 %v2960_v55, %v4337_v7  ;;  %v2963_v40 = vadd.f32 %v2962_v25, %v2961_v0 }
 0x324   :  { %2642 = vst [vmem:[#allocation11 + $0x20] sm:$0xff] %v2528_v12  ;;  %v2531_v47 = vadd.f32 %v2963_v40, %v4337_v7 }
 0x326   :  { %2643 = vst [vmem:[#allocation11 + $0x28] sm:$0xff] %v2531_v47  ;;  %v2964_v32 = vpop.f32.mrb[76].mxu1 }
 0x327   :  { %v2965_v43 = vpop.f32.mrb[77].mxu1 }
 0x328   :  { %v2966_v6 = vadd.f32 %v2965_v43, %v2964_v32  ;;  %v2967_v53 = vpop.f32.mrb[78].mxu1 }
 0x329   :  { %v2968_v38 = vpop.f32.mrb[79].mxu1 }
 0x32a   :  { %v2536_v27 = vadd.f32 %v2966_v6, %v4337_v7  ;;  %v2969_v50 = vadd.f32 %v2968_v38, %v2967_v53 }
 0x32c   :  { %2644 = vst [vmem:[#allocation11 + $0x30] sm:$0xff] %v2536_v27  ;;  %v2539_v3 = vadd.f32 %v2969_v50, %v4337_v7 }
 0x32e   :  { %2645 = vst [vmem:[#allocation11 + $0x38] sm:$0xff] %v2539_v3  ;;  %v2970_v41 = vpop.f32.mrb[80].mxu1 }
 0x32f   :  { %v2971_v62 = vpop.f32.mrb[81].mxu1 }
 0x330   :  { %v2972_v21 = vadd.f32 %v2971_v62, %v2970_v41  ;;  %v2973_v9 = vpop.f32.mrb[82].mxu1 }
 0x331   :  { %v2974_v42 = vpop.f32.mrb[83].mxu1 }
 0x332   :  { %v2544_v35 = vadd.f32 %v2972_v21, %v4337_v7  ;;  %v2975_v13 = vadd.f32 %v2974_v42, %v2973_v9 }
 0x334   :  { %2646 = vst [vmem:[#allocation11 + $0x40] sm:$0xff] %v2544_v35  ;;  %v2547_v18 = vadd.f32 %v2975_v13, %v4337_v7 }
 0x336   :  { %2647 = vst [vmem:[#allocation11 + $0x48] sm:$0xff] %v2547_v18  ;;  %v2976_v58 = vpop.f32.mrb[84].mxu1 }
 0x337   :  { %v2977_v1 = vpop.f32.mrb[85].mxu1 }
 0x338   :  { %v2978_v26 = vadd.f32 %v2977_v1, %v2976_v58  ;;  %v2979_v19 = vpop.f32.mrb[86].mxu1 }
 0x339   :  { %v2980_v14 = vpop.f32.mrb[87].mxu1 }
 0x33a   :  { %v2552_v29 = vadd.f32 %v2978_v26, %v4337_v7  ;;  %v2981_v56 = vadd.f32 %v2980_v14, %v2979_v19 }
 0x33c   :  { %2648 = vst [vmem:[#allocation11 + $0x50] sm:$0xff] %v2552_v29  ;;  %v2555_v4 = vadd.f32 %v2981_v56, %v4337_v7 }
 0x33e   :  { %2649 = vst [vmem:[#allocation11 + $0x58] sm:$0xff] %v2555_v4  ;;  %v2982_v30 = vpop.f32.mrb[88].mxu1 }
 0x33f   :  { %v2983_v16 = vpop.f32.mrb[89].mxu1 }
 0x340   :  { %v2984_v59 = vadd.f32 %v2983_v16, %v2982_v30  ;;  %v2985_v23 = vpop.f32.mrb[90].mxu1 }
 0x341   :  { %v2986_v48 = vpop.f32.mrb[91].mxu1 }
 0x342   :  { %v2560_v60 = vadd.f32 %v2984_v59, %v4337_v7  ;;  %v2987_v51 = vadd.f32 %v2986_v48, %v2985_v23 }
 0x344   :  { %2650 = vst [vmem:[#allocation11 + $0x60] sm:$0xff] %v2560_v60  ;;  %v2563_v36 = vadd.f32 %v2987_v51, %v4337_v7 }
 0x346   :  { %2651 = vst [vmem:[#allocation11 + $0x68] sm:$0xff] %v2563_v36  ;;  %v2988_v15 = vpop.f32.mrb[92].mxu1 }
 0x347   :  { %v2989_v45 = vpop.f32.mrb[93].mxu1 }
 0x348   :  { %v2990_v17 = vadd.f32 %v2989_v45, %v2988_v15  ;;  %v2991_v63 = vpop.f32.mrb[94].mxu1 }
 0x349   :  { %v2992_v20 = vpop.f32.mrb[95].mxu1 }
 0x34a   :  { %v2568_v61 = vadd.f32 %v2990_v17, %v4337_v7  ;;  %v2993_v28 = vadd.f32 %v2992_v20, %v2991_v63 }
 0x34c   :  { %2652 = vst [vmem:[#allocation11 + $0x70] sm:$0xff] %v2568_v61  ;;  %v2571_v24 = vadd.f32 %v2993_v28, %v4337_v7 }
 0x34e   :  { %2653 = vst [vmem:[#allocation11 + $0x78] sm:$0xff] %v2571_v24  ;;  %v2994_v10 = vpop.f32.mrb[96].mxu1 }
 0x34f   :  { %v2995_v44 = vpop.f32.mrb[97].mxu1 }
 0x350   :  { %v2996_v57 = vadd.f32 %v2995_v44, %v2994_v10  ;;  %v2997_v8 = vpop.f32.mrb[98].mxu1 }
 0x351   :  { %v2998_v11 = vpop.f32.mrb[99].mxu1 }
 0x352   :  { %v2576_v52 = vadd.f32 %v2996_v57, %v4337_v7  ;;  %v2999_v5 = vadd.f32 %v2998_v11, %v2997_v8 }
 0x354   :  { %2654 = vst [vmem:[#allocation11 + $0x80] sm:$0xff] %v2576_v52  ;;  %v2579_v2 = vadd.f32 %v2999_v5, %v4337_v7 }
 0x356   :  { %2655 = vst [vmem:[#allocation11 + $0x88] sm:$0xff] %v2579_v2  ;;  %v3000_v33 = vpop.f32.mrb[100].mxu1 }
 0x357   :  { %v3001_v46 = vpop.f32.mrb[101].mxu1 }
 0x358   :  { %v3002_v39 = vadd.f32 %v3001_v46, %v3000_v33  ;;  %v3003_v31 = vpop.f32.mrb[102].mxu1 }
 0x359   :  { %v3004_v54 = vpop.f32.mrb[103].mxu1 }
 0x35a   :  { %v2584_v34 = vadd.f32 %v3002_v39, %v4337_v7  ;;  %v3005_v37 = vadd.f32 %v3004_v54, %v3003_v31 }
 0x35c   :  { %2656 = vst [vmem:[#allocation11 + $0x90] sm:$0xff] %v2584_v34  ;;  %v2587_v49 = vadd.f32 %v3005_v37, %v4337_v7 }
 0x35e   :  { %2657 = vst [vmem:[#allocation11 + $0x98] sm:$0xff] %v2587_v49  ;;  %v3006_v22 = vpop.f32.mrb[104].mxu1 }
 0x35f   :  { %v3007_v55 = vpop.f32.mrb[105].mxu1 }
 0x360   :  { %v3008_v0 = vadd.f32 %v3007_v55, %v3006_v22  ;;  %v3009_v25 = vpop.f32.mrb[106].mxu1 }
 0x361   :  { %v3010_v12 = vpop.f32.mrb[107].mxu1 }
 0x362   :  { %v2592_v40 = vadd.f32 %v3008_v0, %v4337_v7  ;;  %v3011_v47 = vadd.f32 %v3010_v12, %v3009_v25 }
 0x364   :  { %2658 = vst [vmem:[#allocation11 + $0xa0] sm:$0xff] %v2592_v40  ;;  %v2595_v32 = vadd.f32 %v3011_v47, %v4337_v7 }
 0x366   :  { %2659 = vst [vmem:[#allocation11 + $0xa8] sm:$0xff] %v2595_v32  ;;  %v3012_v43 = vpop.f32.mrb[108].mxu1 }
 0x367   :  { %v3013_v6 = vpop.f32.mrb[109].mxu1 }
 0x368   :  { %v3014_v53 = vadd.f32 %v3013_v6, %v3012_v43  ;;  %v3015_v38 = vpop.f32.mrb[110].mxu1 }
 0x369   :  { %v3016_v27 = vpop.f32.mrb[111].mxu1 }
 0x36a   :  { %v2600_v50 = vadd.f32 %v3014_v53, %v4337_v7  ;;  %v3017_v3 = vadd.f32 %v3016_v27, %v3015_v38 }
 0x36c   :  { %2660 = vst [vmem:[#allocation11 + $0xb0] sm:$0xff] %v2600_v50  ;;  %v2603_v41 = vadd.f32 %v3017_v3, %v4337_v7 }
 0x36e   :  { %2661 = vst [vmem:[#allocation11 + $0xb8] sm:$0xff] %v2603_v41  ;;  %v3018_v62 = vpop.f32.mrb[112].mxu1 }
 0x36f   :  { %v3019_v21 = vpop.f32.mrb[113].mxu1 }
 0x370   :  { %v3020_v9 = vadd.f32 %v3019_v21, %v3018_v62  ;;  %v3021_v42 = vpop.f32.mrb[114].mxu1 }
 0x371   :  { %v3022_v35 = vpop.f32.mrb[115].mxu1 }
 0x372   :  { %v2608_v13 = vadd.f32 %v3020_v9, %v4337_v7  ;;  %v3023_v18 = vadd.f32 %v3022_v35, %v3021_v42 }
 0x374   :  { %2662 = vst [vmem:[#allocation11 + $0xc0] sm:$0xff] %v2608_v13  ;;  %v2611_v58 = vadd.f32 %v3023_v18, %v4337_v7 }
 0x376   :  { %2663 = vst [vmem:[#allocation11 + $0xc8] sm:$0xff] %v2611_v58  ;;  %v3024_v1 = vpop.f32.mrb[116].mxu1 }
 0x377   :  { %v3025_v26 = vpop.f32.mrb[117].mxu1 }
 0x378   :  { %v3026_v19 = vadd.f32 %v3025_v26, %v3024_v1  ;;  %v3027_v14 = vpop.f32.mrb[118].mxu1 }
 0x379   :  { %v3028_v29 = vpop.f32.mrb[119].mxu1 }
 0x37a   :  { %v2616_v56 = vadd.f32 %v3026_v19, %v4337_v7  ;;  %v3029_v4 = vadd.f32 %v3028_v29, %v3027_v14 }
 0x37c   :  { %2664 = vst [vmem:[#allocation11 + $0xd0] sm:$0xff] %v2616_v56  ;;  %v2619_v30 = vadd.f32 %v3029_v4, %v4337_v7 }
 0x37e   :  { %2665 = vst [vmem:[#allocation11 + $0xd8] sm:$0xff] %v2619_v30  ;;  %v3030_v16 = vpop.f32.mrb[120].mxu1 }
 0x37f   :  { %v3031_v59 = vpop.f32.mrb[121].mxu1 }
 0x380   :  { %v3032_v23 = vadd.f32 %v3031_v59, %v3030_v16  ;;  %v3033_v48 = vpop.f32.mrb[122].mxu1 }
 0x381   :  { %v3034_v60 = vpop.f32.mrb[123].mxu1 }
 0x382   :  { %v2624_v51 = vadd.f32 %v3032_v23, %v4337_v7  ;;  %v3035_v36 = vadd.f32 %v3034_v60, %v3033_v48 }
 0x384   :  { %2666 = vst [vmem:[#allocation11 + $0xe0] sm:$0xff] %v2624_v51  ;;  %v2627_v15 = vadd.f32 %v3035_v36, %v4337_v7 }
 0x386   :  { %2667 = vst [vmem:[#allocation11 + $0xe8] sm:$0xff] %v2627_v15  ;;  %v3036_v45 = vpop.f32.mrb[124].mxu1 }
 0x387   :  { %v3037_v17 = vpop.f32.mrb[125].mxu1 }
 0x388   :  { %v3038_v63 = vadd.f32 %v3037_v17, %v3036_v45  ;;  %v3039_v20 = vpop.f32.mrb[126].mxu1 }
 0x389   :  { %v3040_v61 = vpop.f32.mrb[127].mxu1 }
 0x38a   :  { %v2632_v28 = vadd.f32 %v3038_v63, %v4337_v7  ;;  %v3041_v24 = vadd.f32 %v3040_v61, %v3039_v20 }
 0x38c   :  { %2668 = vst [vmem:[#allocation11 + $0xf0] sm:$0xff] %v2632_v28  ;;  %v2635_v10 = vadd.f32 %v3041_v24, %v4337_v7 }
 0x38e   :  { %2669 = vst [vmem:[#allocation11 + $0xf8] sm:$0xff] %v2635_v10 }
 0x38f   :  { %3808 = shalt.err (!%p3805_p2)
}
 0x390   :  { %s3809_s12 = scalar_lea.hbm %s4391_s5, 4096 }
 0x391   :  { %p3810_p3 = scmp.ne.s32.totalorder %s4391_s5, %s3809_s12  ;;  %p3813_p4 = scmp.lt.u32.totalorder %s3809_s12, %s4391_s5 }
 0x393   :  { %p3815_p5 = pnand %p3813_p4, %p3810_p3 }
 0x395   :  { %3818 = shalt.err (!%p3815_p5)
}
 0x396   :  { %2681 = dma.vmem_to_hbm [thread:$0]  %s2676_s8, 4096, %s4391_s5, [#allocation4], %s3828_s28, %s3828_s28, %s3829_s29  }
 0x397   :  { %3825 = dma.done.wait [#allocation4], 4096  }
 0x398   :  { %3826 = vsyncadd [#allocation4], 4294963200 }
 0x399   :  { %2685 = vsyncpa [#allocation3], 1 }
 0x39a   :  { %2686 = vsyncpa [#allocation6], 1 }
 0x39b   :  { %2687 = vsyncpa [#allocation9], 1 }
 0x39c   :  { %2688 = vsyncpa [#allocation4], 1 }

</bundles_post_ra>
